<compile_context>
chip_gen: v6e
topology: v6e:2x2x1
jax: 0.10.0
libtpu: 0.0.40
codegen_flags: <defaults>
</compile_context>

<pallas_src>
import functools

import jax
import jax.numpy as jnp
from jax.experimental import pallas as pl
from jax.experimental.pallas import tpu as pltpu


def _dwconv_kernel(xc_ref, xt_ref, xb_ref, w_ref, b_ref, o_ref, xs_ref, *, row_chunk):
    # xc_ref: (TH, W, C)       center rows of this row-block
    # xt_ref: (1, W, C)        row just above the block (clamped at top border -> zeroed here)
    # xb_ref: (1, W, C)        row just below the block (clamped at bottom border -> zeroed here)
    # w_ref:  (3, 3, C)        depthwise taps, (dy, dx, channel)
    # b_ref:  (1, C)           bias
    # o_ref:  (TH, W, C)       output block
    # xs_ref: (TH+2, W+2, C)   VMEM scratch: zero-padded input window for this block
    TH, W, C = o_ref.shape
    i = pl.program_id(1)
    n_h = pl.num_programs(1)

    # ---- assemble the zero-padded window in VMEM (replaces a wrapper-level jnp.pad HBM pass) ----
    zero_col = jnp.zeros((TH + 2, 1, C), xs_ref.dtype)
    xs_ref[:, 0:1, :] = zero_col                          # left padding column
    xs_ref[:, W + 1:W + 2, :] = zero_col                  # right padding column
    top = xt_ref[...]
    bot = xb_ref[...]
    xs_ref[0:1, 1:W + 1, :] = jnp.where(i > 0, top, jnp.zeros_like(top))
    xs_ref[TH + 1:TH + 2, 1:W + 1, :] = jnp.where(i < n_h - 1, bot, jnp.zeros_like(bot))
    xs_ref[1:TH + 1, 1:W + 1, :] = xc_ref[...]

    # Per-tap weights / bias, loaded and cast once (static slices).
    w = [[w_ref[dy, dx, :].astype(jnp.float32) for dx in range(3)] for dy in range(3)]
    bias = b_ref[0, :].astype(jnp.float32)

    # ---- 3x3 depthwise conv, accumulated over static row chunks ----
    # Row (dy) shifts are aligned leading-dim offsets into the scratch; the three column (dx) taps
    # are sublane-shifted slices of one (rh, W+2, C) row slab.  Only the accumulator and a single
    # slab are live at a time, so nothing spills regardless of tile_h.
    for r0 in range(0, TH, row_chunk):
        rh = min(row_chunk, TH - r0)
        acc = jnp.broadcast_to(bias, (rh, W, C))
        for dy in range(3):
            slab = xs_ref[r0 + dy:r0 + dy + rh, :, :].astype(jnp.float32)   # (rh, W+2, C)
            acc = acc + (slab[:, 0:W, :] * w[dy][0]
                         + slab[:, 1:W + 1, :] * w[dy][1]
                         + slab[:, 2:W + 2, :] * w[dy][2])
        o_ref[r0:r0 + rh, :, :] = acc.astype(o_ref.dtype)


def _pick_tile_h(H, W, C, itemsize, budget_bytes=4 << 20):
    """Largest divisor of H whose per-step footprint (double-buffered blocks + padded scratch)
    stays under `budget_bytes` — comfortably inside v5e/v6e/v7x scoped VMEM."""
    best = 1
    for th in range(1, H + 1):
        if H % th:
            continue
        blocks = 2 * ((th + 2) * W * C + th * W * C) * itemsize   # in (center+halos) + out, x2 buffers
        scratch = (th + 2) * (W + 2) * C * itemsize
        if blocks + scratch <= budget_bytes:
            best = th
    return best


def _pick_row_chunk(tile_h, W, C):
    """Chunk of output rows processed at once: keep (f32 accumulator + one padded row slab)
    around ~40 vregs (160 KiB) so the inner compute never spills.  Always divides tile_h."""
    per_row_bytes = (2 * W + 2) * C * 4
    rh = max(1, min(tile_h, (160 * 1024) // max(per_row_bytes, 1)))
    while tile_h % rh:
        rh -= 1
    return rh


def dwconv_pallas(x, weight, bias, H, W, *, tile_h=None):
    """Depthwise 3x3 conv, stride 1, pad 1, groups=C, with bias.

    x: (B, N, C) with N == H*W; weight: (3, 3, C) (= PyTorch (C,1,3,3) permuted tap-major);
    bias: (C,). Returns (B, N, C).
    """
    B, N, C = x.shape
    assert N == H * W, "N must equal H * W"
    assert weight.shape == (3, 3, C)
    assert bias.shape == (C,)

    if tile_h is None:
        tile_h = _pick_tile_h(H, W, C, x.dtype.itemsize)
    assert H % tile_h == 0, "tile_h must divide H"
    n_h = H // tile_h
    row_chunk = _pick_row_chunk(tile_h, W, C)

    # Free reshapes (metadata only): (B, N, C) -> (B, n_h, tile_h, W, C).
    x5 = x.reshape(B, n_h, tile_h, W, C)
    bias2d = bias.reshape(1, C)

    kernel = functools.partial(_dwconv_kernel, row_chunk=row_chunk)

    out5 = pl.pallas_call(
        kernel,
        out_shape=jax.ShapeDtypeStruct((B, n_h, tile_h, W, C), x.dtype),
        grid_spec=pltpu.PrefetchScalarGridSpec(
            num_scalar_prefetch=0,
            grid=(B, n_h),
            in_specs=[
                # Center rows of the block.
                pl.BlockSpec((None, None, tile_h, W, C), lambda b, i: (b, i, 0, 0, 0)),
                # Halo row above: last row of the previous row-block (clamped at the top border).
                pl.BlockSpec((None, None, 1, W, C),
                             lambda b, i: (b, jnp.maximum(i - 1, 0), tile_h - 1, 0, 0)),
                # Halo row below: first row of the next row-block (clamped at the bottom border).
                pl.BlockSpec((None, None, 1, W, C),
                             lambda b, i: (b, jnp.minimum(i + 1, n_h - 1), 0, 0, 0)),
                pl.BlockSpec((3, 3, C), lambda b, i: (0, 0, 0)),
                pl.BlockSpec((1, C), lambda b, i: (0, 0)),
            ],
            out_specs=pl.BlockSpec((None, None, tile_h, W, C), lambda b, i: (b, i, 0, 0, 0)),
            scratch_shapes=[pltpu.VMEM((tile_h + 2, W + 2, C), x.dtype)],
        ),
        compiler_params=pltpu.CompilerParams(
            dimension_semantics=("parallel", "parallel")),
    )(x5, x5, x5, weight, bias2d)

    return out5.reshape(B, N, C)


def dwconv_reference(x, weight, bias, H, W):
    """Pure-JAX reference (same math as PyTorch depthwise Conv2d, k=3, s=1, p=1, groups=C, bias)."""
    B, N, C = x.shape
    x_nhwc = x.reshape(B, H, W, C)
    x_pad = jnp.pad(x_nhwc, ((0, 0), (1, 1), (1, 1), (0, 0)))
    out = jnp.zeros((B, H, W, C), jnp.float32)
    for dy in range(3):
        for dx in range(3):
            out = out + x_pad[:, dy:dy + H, dx:dx + W, :].astype(jnp.float32) * weight[dy, dx, :]
    out = out + bias
    return out.astype(x.dtype).reshape(B, H * W, C)


def _check(key, B, C, H, W, tile_h=None, tol=1e-4):
    kx, kw, kb = jax.random.split(key, 3)
    x = jax.random.normal(kx, (B, H * W, C), dtype=jnp.float32)
    # nn.Conv2d(dim, dim, 3, groups=dim) weight is (dim, 1, 3, 3); stored here tap-major as (3, 3, dim).
    weight = 0.1 * jax.random.normal(kw, (3, 3, C), dtype=jnp.float32)
    bias = 0.01 * jax.random.normal(kb, (C,), dtype=jnp.float32)

    ref = dwconv_reference(x, weight, bias, H, W)
    out = dwconv_pallas(x, weight, bias, H, W, tile_h=tile_h)
    out = jax.block_until_ready(out)
    assert out.shape == (B, H * W, C)
    assert jnp.max(jnp.abs(out - ref)) < tol, (B, C, H, W, tile_h)


if __name__ == "__main__":
    key = jax.random.PRNGKey(0)
    k1, k2, k3 = jax.random.split(key, 3)

    # Multi row-block path (exercises halo rows + border masking), lane-dense C.
    _check(k1, B=2, C=128, H=16, W=16, tile_h=8)
    # Auto-picked tile (single row-block): exercises the degenerate n_h == 1 path.
    _check(k1, B=2, C=128, H=16, W=16, tile_h=None)
    # Module's default dim=768 at a small spatial size: exercises halos + in-kernel row chunking.
    _check(k2, B=1, C=768, H=8, W=8, tile_h=4)
    # Odd, lane-sparse shape: exercises masked lane stores and non-multiple-of-8 widths.
    _check(k3, B=1, C=64, H=6, W=10, tile_h=2)

    print("KERNEL_OK")
</pallas_src>

<mosaic_0001>
module attributes {stable_mosaic.version = 11 : i64} {
  func.func @_dwconv_kernel(%arg0: i32, %arg1: i32, %arg2: memref<1x1x8x16x128xf32, #tpu.memory_space<vmem>>, %arg3: memref<1x1x1x16x128xf32, #tpu.memory_space<vmem>>, %arg4: memref<1x1x1x16x128xf32, #tpu.memory_space<vmem>>, %arg5: memref<3x3x128xf32, #tpu.memory_space<vmem>>, %arg6: memref<1x128xf32, #tpu.memory_space<vmem>>, %arg7: memref<1x1x8x16x128xf32, #tpu.memory_space<vmem>>, %arg8: memref<10x18x128xf32, #tpu.memory_space<vmem>>) attributes {dimension_semantics = [#tpu.dimension_semantics<parallel>, #tpu.dimension_semantics<parallel>], iteration_bounds = array<i64: 2, 2>, scalar_prefetch = 0 : i64, scratch_operands = 1 : i64, tpu.core_type = #tpu.core_type<tc>, window_params = [{transform_indices = @transform_0, window_bounds = array<i64: 1, 1, 8, 16, 128>}, {transform_indices = @transform_1, window_bounds = array<i64: 1, 1, 1, 16, 128>}, {transform_indices = @transform_2, window_bounds = array<i64: 1, 1, 1, 16, 128>}, {pipeline_mode = #tpu.pipeline_mode<synchronous>, transform_indices = @transform_3, window_bounds = array<i64: 3, 3, 128>}, {pipeline_mode = #tpu.pipeline_mode<synchronous>, transform_indices = @transform_4, window_bounds = array<i64: 1, 128>}, {transform_indices = @transform_5, window_bounds = array<i64: 1, 1, 8, 16, 128>}]} {
    %cst = arith.constant 0.000000e+00 : f32
    %0 = vector.broadcast %cst : f32 to vector<10x1x128xf32>
    %c0 = arith.constant 0 : index
    %c0_0 = arith.constant 0 : index
    %c0_1 = arith.constant 0 : index
    %1 = vector.load %arg8[%c0, %c0_0, %c0_1] : memref<10x18x128xf32, #tpu.memory_space<vmem>>, vector<10x1x128xf32>
    tpu.vector_store %arg8[%c0, %c0_0, %c0_1], %0 {strides = array<i32>} : memref<10x18x128xf32, #tpu.memory_space<vmem>>, vector<10x1x128xf32>,
    %c0_2 = arith.constant 0 : index
    %c17 = arith.constant 17 : index
    %c0_3 = arith.constant 0 : index
    %2 = vector.load %arg8[%c0_2, %c17, %c0_3] : memref<10x18x128xf32, #tpu.memory_space<vmem>>, vector<10x1x128xf32>
    tpu.vector_store %arg8[%c0_2, %c17, %c0_3], %0 {strides = array<i32>} : memref<10x18x128xf32, #tpu.memory_space<vmem>>, vector<10x1x128xf32>,
    %c0_4 = arith.constant 0 : index
    %c0_5 = arith.constant 0 : index
    %c0_6 = arith.constant 0 : index
    %c0_7 = arith.constant 0 : index
    %c0_8 = arith.constant 0 : index
    %3 = vector.load %arg3[%c0_4, %c0_5, %c0_6, %c0_7, %c0_8] : memref<1x1x1x16x128xf32, #tpu.memory_space<vmem>>, vector<1x1x1x16x128xf32>
    %4 = vector.shape_cast %3 : vector<1x1x1x16x128xf32> to vector<1x16x128xf32>
    %c0_9 = arith.constant 0 : index
    %c0_10 = arith.constant 0 : index
    %c0_11 = arith.constant 0 : index
    %c0_12 = arith.constant 0 : index
    %c0_13 = arith.constant 0 : index
    %5 = vector.load %arg4[%c0_9, %c0_10, %c0_11, %c0_12, %c0_13] : memref<1x1x1x16x128xf32, #tpu.memory_space<vmem>>, vector<1x1x1x16x128xf32>
    %6 = vector.shape_cast %5 : vector<1x1x1x16x128xf32> to vector<1x16x128xf32>
    %c0_i32 = arith.constant 0 : i32
    %7 = arith.cmpi sgt, %arg1, %c0_i32 : i32
    %cst_14 = arith.constant 0.000000e+00 : f32
    %8 = vector.broadcast %cst_14 : f32 to vector<1x16x128xf32>
    %9 = arith.select %7, %4, %8 : vector<1x16x128xf32>
    %c0_15 = arith.constant 0 : index
    %c1 = arith.constant 1 : index
    %c0_16 = arith.constant 0 : index
    %10 = vector.load %arg8[%c0_15, %c1, %c0_16] : memref<10x18x128xf32, #tpu.memory_space<vmem>>, vector<1x16x128xf32>
    tpu.vector_store %arg8[%c0_15, %c1, %c0_16], %9 {strides = array<i32>} : memref<10x18x128xf32, #tpu.memory_space<vmem>>, vector<1x16x128xf32>,
    %c1_i32 = arith.constant 1 : i32
    %11 = arith.cmpi slt, %arg1, %c1_i32 : i32
    %cst_17 = arith.constant 0.000000e+00 : f32
    %12 = vector.broadcast %cst_17 : f32 to vector<1x16x128xf32>
    %13 = arith.select %11, %6, %12 : vector<1x16x128xf32>
    %c9 = arith.constant 9 : index
    %c1_18 = arith.constant 1 : index
    %c0_19 = arith.constant 0 : index
    %14 = vector.load %arg8[%c9, %c1_18, %c0_19] : memref<10x18x128xf32, #tpu.memory_space<vmem>>, vector<1x16x128xf32>
    tpu.vector_store %arg8[%c9, %c1_18, %c0_19], %13 {strides = array<i32>} : memref<10x18x128xf32, #tpu.memory_space<vmem>>, vector<1x16x128xf32>,
    %c0_20 = arith.constant 0 : index
    %c0_21 = arith.constant 0 : index
    %c0_22 = arith.constant 0 : index
    %c0_23 = arith.constant 0 : index
    %c0_24 = arith.constant 0 : index
    %15 = vector.load %arg2[%c0_20, %c0_21, %c0_22, %c0_23, %c0_24] : memref<1x1x8x16x128xf32, #tpu.memory_space<vmem>>, vector<1x1x8x16x128xf32>
    %16 = vector.shape_cast %15 : vector<1x1x8x16x128xf32> to vector<8x16x128xf32>
    %c1_25 = arith.constant 1 : index
    %c1_26 = arith.constant 1 : index
    %c0_27 = arith.constant 0 : index
    %17 = vector.load %arg8[%c1_25, %c1_26, %c0_27] : memref<10x18x128xf32, #tpu.memory_space<vmem>>, vector<8x16x128xf32>
    tpu.vector_store %arg8[%c1_25, %c1_26, %c0_27], %16 {strides = array<i32>} : memref<10x18x128xf32, #tpu.memory_space<vmem>>, vector<8x16x128xf32>,
    %c0_28 = arith.constant 0 : index
    %c0_29 = arith.constant 0 : index
    %c0_30 = arith.constant 0 : index
    %18 = vector.load %arg5[%c0_28, %c0_29, %c0_30] : memref<3x3x128xf32, #tpu.memory_space<vmem>>, vector<1x1x128xf32>
    %19 = vector.shape_cast %18 : vector<1x1x128xf32> to vector<128xf32>
    %c0_31 = arith.constant 0 : index
    %c1_32 = arith.constant 1 : index
    %c0_33 = arith.constant 0 : index
    %20 = vector.load %arg5[%c0_31, %c1_32, %c0_33] : memref<3x3x128xf32, #tpu.memory_space<vmem>>, vector<1x1x128xf32>
    %21 = vector.shape_cast %20 : vector<1x1x128xf32> to vector<128xf32>
    %c0_34 = arith.constant 0 : index
    %c2 = arith.constant 2 : index
    %c0_35 = arith.constant 0 : index
    %22 = vector.load %arg5[%c0_34, %c2, %c0_35] : memref<3x3x128xf32, #tpu.memory_space<vmem>>, vector<1x1x128xf32>
    %23 = vector.shape_cast %22 : vector<1x1x128xf32> to vector<128xf32>
    %c1_36 = arith.constant 1 : index
    %c0_37 = arith.constant 0 : index
    %c0_38 = arith.constant 0 : index
    %24 = vector.load %arg5[%c1_36, %c0_37, %c0_38] : memref<3x3x128xf32, #tpu.memory_space<vmem>>, vector<1x1x128xf32>
    %25 = vector.shape_cast %24 : vector<1x1x128xf32> to vector<128xf32>
    %c1_39 = arith.constant 1 : index
    %c1_40 = arith.constant 1 : index
    %c0_41 = arith.constant 0 : index
    %26 = vector.load %arg5[%c1_39, %c1_40, %c0_41] : memref<3x3x128xf32, #tpu.memory_space<vmem>>, vector<1x1x128xf32>
    %27 = vector.shape_cast %26 : vector<1x1x128xf32> to vector<128xf32>
    %c1_42 = arith.constant 1 : index
    %c2_43 = arith.constant 2 : index
    %c0_44 = arith.constant 0 : index
    %28 = vector.load %arg5[%c1_42, %c2_43, %c0_44] : memref<3x3x128xf32, #tpu.memory_space<vmem>>, vector<1x1x128xf32>
    %29 = vector.shape_cast %28 : vector<1x1x128xf32> to vector<128xf32>
    %c2_45 = arith.constant 2 : index
    %c0_46 = arith.constant 0 : index
    %c0_47 = arith.constant 0 : index
    %30 = vector.load %arg5[%c2_45, %c0_46, %c0_47] : memref<3x3x128xf32, #tpu.memory_space<vmem>>, vector<1x1x128xf32>
    %31 = vector.shape_cast %30 : vector<1x1x128xf32> to vector<128xf32>
    %c2_48 = arith.constant 2 : index
    %c1_49 = arith.constant 1 : index
    %c0_50 = arith.constant 0 : index
    %32 = vector.load %arg5[%c2_48, %c1_49, %c0_50] : memref<3x3x128xf32, #tpu.memory_space<vmem>>, vector<1x1x128xf32>
    %33 = vector.shape_cast %32 : vector<1x1x128xf32> to vector<128xf32>
    %c2_51 = arith.constant 2 : index
    %c2_52 = arith.constant 2 : index
    %c0_53 = arith.constant 0 : index
    %34 = vector.load %arg5[%c2_51, %c2_52, %c0_53] : memref<3x3x128xf32, #tpu.memory_space<vmem>>, vector<1x1x128xf32>
    %35 = vector.shape_cast %34 : vector<1x1x128xf32> to vector<128xf32>
    %c0_54 = arith.constant 0 : index
    %c0_55 = arith.constant 0 : index
    %36 = vector.load %arg6[%c0_54, %c0_55] : memref<1x128xf32, #tpu.memory_space<vmem>>, vector<1x128xf32>
    %37 = vector.shape_cast %36 : vector<1x128xf32> to vector<128xf32>
    %38 = vector.shape_cast %37 : vector<128xf32> to vector<1x1x128xf32>
    %39 = vector.broadcast %38 : vector<1x1x128xf32> to vector<8x16x128xf32>
    %c0_56 = arith.constant 0 : index
    %c0_57 = arith.constant 0 : index
    %c0_58 = arith.constant 0 : index
    %40 = vector.load %arg8[%c0_56, %c0_57, %c0_58] : memref<10x18x128xf32, #tpu.memory_space<vmem>>, vector<8x18x128xf32>
    %41 = vector.extract_strided_slice %40 {offsets = [0, 0, 0], sizes = [8, 16, 128], strides = [1, 1, 1]} : vector<8x18x128xf32> to vector<8x16x128xf32>
    %42 = vector.shape_cast %19 : vector<128xf32> to vector<1x1x128xf32>
    %43 = vector.broadcast %42 : vector<1x1x128xf32> to vector<8x16x128xf32>
    %44 = arith.mulf %41, %43 : vector<8x16x128xf32>
    %45 = vector.extract_strided_slice %40 {offsets = [0, 1, 0], sizes = [8, 16, 128], strides = [1, 1, 1]} : vector<8x18x128xf32> to vector<8x16x128xf32>
    %46 = vector.shape_cast %21 : vector<128xf32> to vector<1x1x128xf32>
    %47 = vector.broadcast %46 : vector<1x1x128xf32> to vector<8x16x128xf32>
    %48 = arith.mulf %45, %47 : vector<8x16x128xf32>
    %49 = arith.addf %44, %48 : vector<8x16x128xf32>
    %50 = vector.extract_strided_slice %40 {offsets = [0, 2, 0], sizes = [8, 16, 128], strides = [1, 1, 1]} : vector<8x18x128xf32> to vector<8x16x128xf32>
    %51 = vector.shape_cast %23 : vector<128xf32> to vector<1x1x128xf32>
    %52 = vector.broadcast %51 : vector<1x1x128xf32> to vector<8x16x128xf32>
    %53 = arith.mulf %50, %52 : vector<8x16x128xf32>
    %54 = arith.addf %49, %53 : vector<8x16x128xf32>
    %55 = arith.addf %39, %54 : vector<8x16x128xf32>
    %c1_59 = arith.constant 1 : index
    %c0_60 = arith.constant 0 : index
    %c0_61 = arith.constant 0 : index
    %56 = vector.load %arg8[%c1_59, %c0_60, %c0_61] : memref<10x18x128xf32, #tpu.memory_space<vmem>>, vector<8x18x128xf32>
    %57 = vector.extract_strided_slice %56 {offsets = [0, 0, 0], sizes = [8, 16, 128], strides = [1, 1, 1]} : vector<8x18x128xf32> to vector<8x16x128xf32>
    %58 = vector.shape_cast %25 : vector<128xf32> to vector<1x1x128xf32>
    %59 = vector.broadcast %58 : vector<1x1x128xf32> to vector<8x16x128xf32>
    %60 = arith.mulf %57, %59 : vector<8x16x128xf32>
    %61 = vector.extract_strided_slice %56 {offsets = [0, 1, 0], sizes = [8, 16, 128], strides = [1, 1, 1]} : vector<8x18x128xf32> to vector<8x16x128xf32>
    %62 = vector.shape_cast %27 : vector<128xf32> to vector<1x1x128xf32>
    %63 = vector.broadcast %62 : vector<1x1x128xf32> to vector<8x16x128xf32>
    %64 = arith.mulf %61, %63 : vector<8x16x128xf32>
    %65 = arith.addf %60, %64 : vector<8x16x128xf32>
    %66 = vector.extract_strided_slice %56 {offsets = [0, 2, 0], sizes = [8, 16, 128], strides = [1, 1, 1]} : vector<8x18x128xf32> to vector<8x16x128xf32>
    %67 = vector.shape_cast %29 : vector<128xf32> to vector<1x1x128xf32>
    %68 = vector.broadcast %67 : vector<1x1x128xf32> to vector<8x16x128xf32>
    %69 = arith.mulf %66, %68 : vector<8x16x128xf32>
    %70 = arith.addf %65, %69 : vector<8x16x128xf32>
    %71 = arith.addf %55, %70 : vector<8x16x128xf32>
    %c2_62 = arith.constant 2 : index
    %c0_63 = arith.constant 0 : index
    %c0_64 = arith.constant 0 : index
    %72 = vector.load %arg8[%c2_62, %c0_63, %c0_64] : memref<10x18x128xf32, #tpu.memory_space<vmem>>, vector<8x18x128xf32>
    %73 = vector.extract_strided_slice %72 {offsets = [0, 0, 0], sizes = [8, 16, 128], strides = [1, 1, 1]} : vector<8x18x128xf32> to vector<8x16x128xf32>
    %74 = vector.shape_cast %31 : vector<128xf32> to vector<1x1x128xf32>
    %75 = vector.broadcast %74 : vector<1x1x128xf32> to vector<8x16x128xf32>
    %76 = arith.mulf %73, %75 : vector<8x16x128xf32>
    %77 = vector.extract_strided_slice %72 {offsets = [0, 1, 0], sizes = [8, 16, 128], strides = [1, 1, 1]} : vector<8x18x128xf32> to vector<8x16x128xf32>
    %78 = vector.shape_cast %33 : vector<128xf32> to vector<1x1x128xf32>
    %79 = vector.broadcast %78 : vector<1x1x128xf32> to vector<8x16x128xf32>
    %80 = arith.mulf %77, %79 : vector<8x16x128xf32>
    %81 = arith.addf %76, %80 : vector<8x16x128xf32>
    %82 = vector.extract_strided_slice %72 {offsets = [0, 2, 0], sizes = [8, 16, 128], strides = [1, 1, 1]} : vector<8x18x128xf32> to vector<8x16x128xf32>
    %83 = vector.shape_cast %35 : vector<128xf32> to vector<1x1x128xf32>
    %84 = vector.broadcast %83 : vector<1x1x128xf32> to vector<8x16x128xf32>
    %85 = arith.mulf %82, %84 : vector<8x16x128xf32>
    %86 = arith.addf %81, %85 : vector<8x16x128xf32>
    %87 = arith.addf %71, %86 : vector<8x16x128xf32>
    %c0_65 = arith.constant 0 : index
    %c0_66 = arith.constant 0 : index
    %c0_67 = arith.constant 0 : index
    %c0_68 = arith.constant 0 : index
    %c0_69 = arith.constant 0 : index
    %88 = vector.load %arg7[%c0_65, %c0_66, %c0_67, %c0_68, %c0_69] : memref<1x1x8x16x128xf32, #tpu.memory_space<vmem>>, vector<1x1x8x16x128xf32>
    %89 = vector.shape_cast %88 : vector<1x1x8x16x128xf32> to vector<8x16x128xf32>
    %90 = vector.shape_cast %87 : vector<8x16x128xf32> to vector<1x1x8x16x128xf32>
    tpu.vector_store %arg7[%c0_65, %c0_66, %c0_67, %c0_68, %c0_69], %90 {strides = array<i32>} : memref<1x1x8x16x128xf32, #tpu.memory_space<vmem>>, vector<1x1x8x16x128xf32>,
    return
  }
  func.func @transform_0(%arg0: i32, %arg1: i32) -> (i32, i32, i32, i32, i32) {
    %c0_i32 = arith.constant 0 : i32
    %c0_i32_0 = arith.constant 0 : i32
    %c0_i32_1 = arith.constant 0 : i32
    %c0_i32_2 = arith.constant 0 : i32
    return %arg0, %arg1, %c0_i32, %c0_i32_0, %c0_i32_1 : i32, i32, i32, i32, i32
  }
  func.func @transform_1(%arg0: i32, %arg1: i32) -> (i32, i32, i32, i32, i32) {
    %c1_i32 = arith.constant 1 : i32
    %0 = arith.subi %arg1, %c1_i32 : i32
    %c0_i32 = arith.constant 0 : i32
    %1 = arith.maxsi %0, %c0_i32 : i32
    %c7_i32 = arith.constant 7 : i32
    %c0_i32_0 = arith.constant 0 : i32
    %c0_i32_1 = arith.constant 0 : i32
    %c0_i32_2 = arith.constant 0 : i32
    return %arg0, %1, %c7_i32, %c0_i32_0, %c0_i32_1 : i32, i32, i32, i32, i32
  }
  func.func @transform_2(%arg0: i32, %arg1: i32) -> (i32, i32, i32, i32, i32) {
    %c1_i32 = arith.constant 1 : i32
    %0 = arith.addi %arg1, %c1_i32 : i32
    %c1_i32_0 = arith.constant 1 : i32
    %1 = arith.minsi %0, %c1_i32_0 : i32
    %c0_i32 = arith.constant 0 : i32
    %c0_i32_1 = arith.constant 0 : i32
    %c0_i32_2 = arith.constant 0 : i32
    %c0_i32_3 = arith.constant 0 : i32
    return %arg0, %1, %c0_i32, %c0_i32_1, %c0_i32_2 : i32, i32, i32, i32, i32
  }
  func.func @transform_3(%arg0: i32, %arg1: i32) -> (i32, i32, i32) {
    %c0_i32 = arith.constant 0 : i32
    %c0_i32_0 = arith.constant 0 : i32
    %c0_i32_1 = arith.constant 0 : i32
    %c0_i32_2 = arith.constant 0 : i32
    return %c0_i32, %c0_i32_0, %c0_i32_1 : i32, i32, i32
  }
  func.func @transform_4(%arg0: i32, %arg1: i32) -> (i32, i32) {
    %c0_i32 = arith.constant 0 : i32
    %c0_i32_0 = arith.constant 0 : i32
    %c0_i32_1 = arith.constant 0 : i32
    return %c0_i32, %c0_i32_0 : i32, i32
  }
  func.func @transform_5(%arg0: i32, %arg1: i32) -> (i32, i32, i32, i32, i32) {
    %c0_i32 = arith.constant 0 : i32
    %c0_i32_0 = arith.constant 0 : i32
    %c0_i32_1 = arith.constant 0 : i32
    %c0_i32_2 = arith.constant 0 : i32
    return %arg0, %arg1, %c0_i32, %c0_i32_0, %c0_i32_1 : i32, i32, i32, i32, i32
  }
}

</mosaic_0001>

<bundles_post_ra>
// kernel: tpu_custom_call.1
= control target key start
LH: loop header
LB: loop body
LE: loop exit
PB: predicated region body
PF: predicated region fallthrough
CT: control target
= control target key end

     0   :  { %s3102_s0 = inlined_call_operand.hbm [shape: f32[2,2,8,16,128], index: 0, kind: input, shape index: {}]   ;;  %s3103_s1 = inlined_call_operand.hbm [shape: f32[2,2,8,16,128], index: 1, kind: input, shape index: {}]   ;;  %s3104_s2 = inlined_call_operand.hbm [shape: f32[2,2,8,16,128], index: 2, kind: input, shape index: {}]   ;;  %s3105_s3 = inlined_call_operand.hbm [shape: f32[3,3,128], index: 3, kind: input, shape index: {}]   ;;  %s3106_s4 = inlined_call_operand.vmem [shape: f32[1,128], index: 4, kind: input, shape index: {}]   ;;  %s3107_s5 = inlined_call_operand.hbm [shape: f32[2,2,8,16,128], index: 5, kind: output, shape index: {}]  }
   0x1   :  { %3131 = sst [smem:[#allocation27_spill]] %s3103_s1 }
   0x2   :  { %3132 = sst [smem:[#allocation28_spill]] %s3104_s2 }
   0x3   :  { %3133 = sst [smem:[#allocation29_spill]] %s3105_s3 }
   0x4   :  { %3134 = sst [smem:[#allocation30_spill]] %s3106_s4 }
   0x5   :  { %3135 = sst [smem:[#allocation31_spill]] %s3107_s5 }
   0x6   :  { %10 = vsyncpa [#allocation4], 0 }
   0x7   :  { %12 = vsyncpa [#allocation4 + $0x1], 0 }
   0x8   :  { %13 = vsyncpa [#allocation7], 0 }
   0x9   :  { %15 = vsyncpa [#allocation7 + $0x1], 0 }
   0xa   :  { %16 = vsyncpa [#allocation10], 0 }
   0xb   :  { %17 = vsyncpa [#allocation5], 0 }
   0xc   :  { %19 = vsyncpa [#allocation5 + $0x1], 0  ;;  %s2120_s18 = smov 0   ;;  %s2122_s19 = smov 0  }
   0xd   :  { %s2124_s20 = smov 0   ;;  %s2126_s21 = smov 0  }
   0xe   :  { %s2128_s22 = smov 0   ;;  %s2130_s23 = smov 0  }
   0xf   :  { %s2132_s24 = smov 0   ;;  %s2134_s25 = smov 0  }
  0x10   :  { %s2136_s26 = smov 0   ;;  %s2138_s27 = smov 0  }
  0x11   :  { %s2140_s28 = smov 0   ;;  %s2142_s29 = smov 0  }
  0x12   :  { %s2144_s30 = smov 0   ;;  %s2146_s6 = smov 0  }
  0x13 LB: > { %3136 = sst [smem:[#allocation17_spill]] %s2044_s23  ;;  %s34_s7 = sadd.s32 1, %s2068_s29  ;;  %s2076_s6 = sphi %s2146_s6, %s25_s6   ;;  %s2072_s30 = sphi %s2144_s30, %s3202_s30   ;;  %s2068_s29 = sphi %s2142_s29, %s3191_s29   ;;  %s2064_s28 = sphi %s2140_s28, %s3201_s28   ;;  %s2060_s27 = sphi %s2138_s27, %s3200_s27   ;;  %s2056_s26 = sphi %s2136_s26, %s3189_s26   ;;  %s2052_s25 = sphi %s2134_s25, %s3199_s25   ;;  %s2048_s24 = sphi %s2132_s24, %s3198_s24   ;;  %s2044_s23 = sphi %s2130_s23, %s3187_s23   ;;  %s2040_s22 = sphi %s2128_s22, %s3197_s22   ;;  %s2036_s21 = sphi %s2126_s21, %s3196_s21   ;;  %s2032_s20 = sphi %s2124_s20, %s3195_s20   ;;  %s2028_s19 = sphi %s2122_s19, %s3194_s19   ;;  %s2024_s18 = sphi %s2120_s18, %s3193_s18  }
  0x14   : > { %3137 = sst [smem:[#allocation18_spill]] %s2056_s26  ;;  %s37_s8 = sadd.s32 1, %s2072_s30 }
  0x15   : > { %3138 = sst [smem:[#allocation19_spill]] %s2060_s27  ;;  %p35_p0 = scmp.ge.s32.totalorder %s34_s7, 2 }
  0x16   : > { %3139 = sst [smem:[#allocation20_spill]] %s2064_s28  ;;  %p3117_p1 = scmp.eq.s32.totalorder %s2076_s6, 0 }
  0x17   : > { %3140 = sst [smem:[#allocation21_spill]] %s2068_s29  ;;  %s80_s9 = sadd.s32 1, %s2044_s23 }
  0x18   : > { %s3204_s7 = smov (%p35_p0, %s34_s7), 0  ;;  %s3206_s8 = smov (!%p35_p0, %s37_s8), %s2072_s30 }
  0x19   : > { %3141 = sst [smem:[#allocation22_spill]] %s3204_s7  ;;  %s42_s10 = ssub.s32 %s2068_s29, %s3204_s7 }
  0x1a   : > { %p39_p2 = scmp.ge.s32.totalorder %s3206_s8, 2  ;;  %p87_p3 = scmp.ne.s32.totalorder %s2044_s23, %s2040_s22 }
  0x1b   : > { %p3116_p7 = scmp.lt.s32.totalorder %s2076_s6, 4  ;;  %s260_s15 = sand.u32 1, %s2076_s6  }
  0x1c   : > { %s3208_s8 = smov (%p39_p2, %s3206_s8), 0  ;;  %p2214_p5 = por %p87_p3, %p3117_p1 }
  0x1d   : > { %3142 = sst [smem:[#allocation23_spill]] %s3208_s8  ;;  %s2205_s11 = ssub.s32 %s2072_s30, %s3208_s8 }
  0x1e   : > { %s2210_s12 = sor.u32 %s42_s10, %s2205_s11  ;;  %p3115_p8 = scmp.eq.s32.totalorder %s2205_s11, 0 }
  0x1f   : > { %s262_s16 = sand.u32 1, %s2044_s23   ;;  %s3114_s10 = sshll.u32 %s2072_s30, 12 }
  0x20   : > { %s2227_s17 = scalar_select %p3115_p8, %s2044_s23, %s80_s9  }
  0x21   : > { %s1598_s8 = sshll.u32 %s262_s16, 4  ;;  %s3145_s1 = sld [smem:[#allocation27_spill]] }
  0x22   : > { %3144 = sst [smem:[#allocation24_spill]] %s2227_s17  ;;  %s264_s7 = scalar_lea.vmem [#allocation6], %s1598_s8 }
  0x23   : > { %s277_s5 = sshll.u32 %s264_s7, 4  ;;  %p2243_p9 = pnand %p3116_p7, %p2214_p5  ;;  %s2235_s5 = int_to_ptr.vmem [resolvable:$true] %s277_s5 }
  0x24   : > { %s2247_s8 = scalar_lea.sflag [#allocation7], %s260_s15 }
  0x25   : > { %p1807_p11 = pneg %p2243_p9 }
  0x27   : > { %s1483_s27 = scalar_lea.hbm %s3145_s1, %s3114_s10  ;;  %s1810_s13 = scalar_lea.hbm %s3145_s1, 8192 }
  0x28   : > { %s2237_s2 = scalar_lea.hbm %s1483_s27, 1792  ;;  %s1833_s7 = scalar_lea.hbm %s1483_s27, 2048 }
  0x29   : > { %p1806_p10 = scmp.ne.s32.totalorder %s2237_s2, %s1833_s7  ;;  %p1811_p0 = scmp.lt.s32.totalorder %s2237_s2, %s3145_s1 }
  0x2a   : > { %p1812_p2 = scmp.lt.s32.totalorder %s1810_s13, %s1833_s7 }
  0x2b   : > { %p1808_p12 = pnand %p1807_p11, %p1806_p10 }
  0x2c   : > { %p1813_p3 = por %p1812_p2, %p1811_p0 }
  0x2d   : > { %p1809_p13 = pneg %p1808_p12 }
  0x2f   : > { %p1814_p5 = pnand %p1813_p3, %p1809_p13 }
  0x31   : > { %1817 = shalt.err (!%p1814_p5)
}
  0x32   : > { %s1818_s27 = scalar_lea.vmem %s2235_s5, 256  ;;  %s2078_s15 = smov [#allocation6]  }
  0x33   : > { %p1819_p8 = scmp.ne.s32.totalorder %s2235_s5, %s1818_s27  ;;  %s1823_s14 = sshll.u32 %s2078_s15, 4  ;;  %s1824_s14 = int_to_ptr.vmem [resolvable:$false] %s1823_s14 }
  0x34   : > { %s1825_s4 = scalar_lea.vmem %s1824_s14, 512  ;;  %p1826_p12 = scmp.lt.s32.totalorder %s2235_s5, %s1824_s14 }
  0x35   : > { %p1821_p7 = pnand %p1819_p8, %p1807_p11  ;;  %p1827_p1 = scmp.lt.s32.totalorder %s1825_s4, %s1818_s27 }
  0x37   : > { %p1822_p10 = pneg %p1821_p7  ;;  %p1828_p6 = por %p1827_p1, %p1826_p12 }
  0x39   : > { %p1829_p4 = pnand %p1828_p6, %p1822_p10 }
  0x3b   : > { %1832 = shalt.err (!%p1829_p4)
}
  0x3c   : > { %s3118_s10 = smov 128   ;;  %s3120_s7 = smov 8  }
  0x3d   : > { %1651 = dma.hbm_to_vmem [thread:$0]  (!%p2243_p9), %s2237_s2, 256, %s2235_s5, %s2247_s8, %s3118_s10, %s3118_s10, %s3120_s7  }
  0x3e   : > { %s2271_s14 = sadd.s32 4294967295, %s2076_s6   ;;  %p1591_p6 = scmp.ge.s32.totalorder %s2076_s6, 1 }
  0x3f   : > { %p3126_p1 = scmp.eq.s32.totalorder %s2271_s14, 0  ;;  %p208_p7 = scmp.lt.s32.totalorder %s2076_s6, 5 }
  0x40   : > { %p3147_p8 = scmp.ne.s32.totalorder %s2040_s22, %s2036_s21  ;;  %s2081_s2 = smov [#allocation9]  }
  0x41   : > { %p2286_p13 = pnand %p1591_p6, %p208_p7  ;;  %s220_s5 = sshll.u32 %s2081_s2, 4  ;;  %s221_s5 = int_to_ptr.vmem [resolvable:$true] %s220_s5 }
  0x42   : > { %p2282_p11 = por %p3147_p8, %p3126_p1  ;;  %s1845_s13 = scalar_lea.vmem %s221_s5, 192 }
  0x43   : > { %p1641_p9 = pneg %p2286_p13  ;;  %p1846_p3 = scmp.ne.s32.totalorder %s221_s5, %s1845_s13 }
  0x44   : > { %s3148_s28 = scalar_select %p2282_p11, 1, 0 }
  0x45   : > { %p1642_p0 = pnand %p1641_p9, %p3126_p1  ;;  %p1853_p12 = scmp.lt.s32.totalorder %s221_s5, %s221_s5 }
  0x46   : > { %p1854_p8 = scmp.lt.s32.totalorder %s1845_s13, %s1845_s13 }
  0x47   : > { %p1836_p2 = pneg %p1642_p0 }
  0x48   : > { %p1855_p4 = por %p1854_p8, %p1853_p12 }
  0x49   : > { %p1848_p5 = pnand %p1846_p3, %p1836_p2 }
  0x4b   : > { %p1849_p10 = pneg %p1848_p5 }
  0x4d   : > { %p1856_p6 = pnand %p1855_p4, %p1849_p10 }
  0x4f   : > { %1859 = shalt.err (!%p1856_p6)
}
  0x50   : > { %s2082_s21 = smov 64   ;;  %s2083_s16 = smov 4  }
  0x51   : > { %s3150_s3 = sld [smem:[#allocation29_spill]]  ;;  %s1588_s4 = sadd.s32 4294967294, %s2076_s6  }
  0x52   : > { %s46_s2 = sadd.s32 1, %s2056_s26  ;;  %p53_p4 = scmp.ne.s32.totalorder %s2056_s26, %s2052_s25 }
  0x53   : > { %p3151_p7 = scmp.eq.s32.totalorder %s2210_s12, 0  ;;  %p3153_p9 = scmp.eq.s32.totalorder %s2076_s6, 0 }
  0x54   : > { %p59_p3 = scmp.ne.s32.totalorder %s2052_s25, %s2048_s24  ;;  %p3155_p5 = scmp.eq.s32.totalorder %s2271_s14, 3 }
  0x55   : > { %s2304_s13 = scalar_select %p3151_p7, %s2056_s26, %s46_s2  }
  0x56   : > { %p2308_p2 = por %p3153_p9, %p53_p4  ;;  %p2316_p10 = por %p3155_p5, %p53_p4 }
  0x57   : > { %1644 = dma.hbm_to_vmem [thread:$0]  (!%p1642_p0), %s3150_s3, 192, %s221_s5, [#allocation10], %s2082_s21, %s2082_s21, %s2083_s16  }
  0x58   : > { %3152 = sst [smem:[#allocation25_spill]] %s2304_s13  ;;  %p201_p0 = scmp.eq.s32.totalorder %s1588_s4, 3 }
  0x59   : > { %s3156_s7 = scalar_select %p2316_p10, 1, 0 }
  0x5a   : > { %p2322_p12 = por %p3126_p1, %p59_p3  ;;  %s237_s12 = sand.u32 1, %s2056_s26  }
  0x5b   : > { %p2327_p8 = por %p201_p0, %p59_p3  ;;  %s1594_s16 = sshll.u32 %s237_s12, 7 }
  0x5c   : > { %s3157_s5 = scalar_select %p2322_p12, 1, 0 }
  0x5d   : > { %s3158_s21 = scalar_select %p2327_p8, 1, 0 }
  0x5e   : > { %s1595_s27 = sshll.u32 %s2068_s29, 4  ;;  %s3160_s15 = sshll.u32 %s2072_s30, 5 }
  0x5f   : > { %3159 = sst [smem:[#allocation26_spill]] %s3158_s21  ;;  %s247_s2 = sadd.s32 %s3160_s15, %s1595_s27 }
  0x60   : > { %s1597_s1 = sshll.u32 %s247_s2, 7  ;;  %s241_s3 = scalar_lea.vmem [#allocation3], %s1594_s16 }
  0x61   : > { %s250_s13 = sshll.u32 %s241_s3, 4  ;;  %s249_s4 = scalar_lea.hbm %s3102_s0, %s1597_s1  ;;  %s251_s13 = int_to_ptr.vmem [resolvable:$true] %s250_s13 }
  0x62   : > { %p3161_p6 = scmp.lt.s32.totalorder %s2076_s6, 4  ;;  %s238_s21 = scalar_lea.sflag [#allocation4], %s237_s12 }
  0x63   : > { %s1873_s29 = scalar_lea.vmem %s251_s13, 2048  ;;  %s2084_s3 = smov [#allocation3]  }
  0x64   : > { %p2341_p4 = pnand %p3161_p6, %p2308_p2  ;;  %p1874_p9 = scmp.ne.s32.totalorder %s251_s13, %s1873_s29 }
  0x65   : > { %s1878_s16 = sshll.u32 %s2084_s3, 4  ;;  %s1879_s16 = int_to_ptr.vmem [resolvable:$false] %s1878_s16 }
  0x66   : > { %p1862_p7 = pneg %p2341_p4  ;;  %s1880_s23 = scalar_lea.vmem %s1879_s16, 4096 }
  0x67   : > { %p1881_p0 = scmp.lt.s32.totalorder %s251_s13, %s1879_s16  ;;  %p1882_p1 = scmp.lt.s32.totalorder %s1880_s23, %s1873_s29 }
  0x68   : > { %p1876_p3 = pnand %p1874_p9, %p1862_p7 }
  0x69   : > { %p1883_p8 = por %p1882_p1, %p1881_p0 }
  0x6a   : > { %p1877_p5 = pneg %p1876_p3 }
  0x6c   : > { %p1884_p10 = pnand %p1883_p8, %p1877_p5 }
  0x6e   : > { %1887 = shalt.err (!%p1884_p10)
}
  0x6f   : > { %s3163_s1 = smov 8   ;;  %s3164_s17 = smov 128  }
  0x70   : > { %1648 = dma.hbm_to_vmem [thread:$0]  (!%p2341_p4), %s249_s4, 2048, %s251_s13, %s238_s21, %s3164_s17, %s3164_s17, %s3163_s1  }
  0x71   : > { %s114_s29 = sadd.s32 1, %s2032_s20  ;;  %p121_p1 = scmp.ne.s32.totalorder %s2032_s20, %s2028_s19 }
  0x72   : > { %p127_p2 = scmp.ne.s32.totalorder %s2028_s19, %s2024_s18  ;;  %s289_s26 = sand.u32 1, %s2032_s20  }
  0x73   : > { %p3165_p10 = scmp.eq.s32.totalorder %s2076_s6, 0  ;;  %p3166_p6 = scmp.eq.s32.totalorder %s2271_s14, 0 }
  0x74   : > { %s1603_s12 = sshll.u32 %s289_s26, 4  ;;  %p3168_p9 = scmp.eq.s32.totalorder %s2205_s11, 0 }
  0x75   : > { %p123_p8 = por %p121_p1, %p3165_p10  ;;  %p2362_p7 = por %p127_p2, %p3166_p6 }
  0x76   : > { %s2369_s27 = scalar_select %p3168_p9, %s2032_s20, %s114_s29  }
  0x77   : > { %s3167_s10 = scalar_select %p2362_p7, 1, 0 }
  0x78   : > { %s3169_s15 = sshll.u32 %s2072_s30, 12  ;;  %s291_s3 = scalar_lea.vmem [#allocation8], %s1603_s12 }
  0x79   : > { %s2020_s2 = sadd.s32 2048, %s3169_s15  ;;  %s303_s16 = sshll.u32 %s291_s3, 4  ;;  %s304_s16 = int_to_ptr.vmem [resolvable:$true] %s303_s16 }
  0x7a   : > { %s3170_s4 = sld [smem:[#allocation28_spill]]  ;;  %p3171_p4 = scmp.lt.s32.totalorder %s2076_s6, 4 }
  0x7c   : > { %p2380_p3 = pnand %p3171_p4, %p123_p8 }
  0x7e   : > { %p1890_p0 = pneg %p2380_p3 }
  0x80   : > { %s2376_s18 = scalar_lea.hbm %s3170_s4, %s2020_s2  ;;  %s1893_s12 = scalar_lea.hbm %s3170_s4, 8192 }
  0x81   : > { %s1888_s11 = scalar_lea.hbm %s2376_s18, 256 }
  0x82   : > { %p1889_p5 = scmp.ne.s32.totalorder %s2376_s18, %s1888_s11  ;;  %p1895_p10 = scmp.lt.s32.totalorder %s1893_s12, %s1888_s11 }
  0x84   : > { %p1891_p1 = pnand %p1890_p0, %p1889_p5 }
  0x86   : > { %p1892_p2 = pneg %p1891_p1 }
  0x88   : > { %p1897_p6 = pnand %p1895_p10, %p1892_p2 }
  0x8a   : > { %1900 = shalt.err (!%p1897_p6)
}
  0x8b   : > { %s1901_s15 = scalar_lea.vmem %s304_s16, 256  ;;  %s2085_s2 = smov [#allocation8]  }
  0x8c   : > { %p1902_p9 = scmp.ne.s32.totalorder %s304_s16, %s1901_s15  ;;  %s1906_s3 = sshll.u32 %s2085_s2, 4  ;;  %s1907_s3 = int_to_ptr.vmem [resolvable:$false] %s1906_s3 }
  0x8d   : > { %s1908_s13 = scalar_lea.vmem %s1907_s3, 512  ;;  %p1909_p7 = scmp.lt.s32.totalorder %s304_s16, %s1907_s3 }
  0x8e   : > { %p1904_p8 = pnand %p1902_p9, %p1890_p0  ;;  %p1910_p11 = scmp.lt.s32.totalorder %s1908_s13, %s1901_s15 }
  0x90   : > { %p1905_p4 = pneg %p1904_p8  ;;  %p1911_p12 = por %p1910_p11, %p1909_p7 }
  0x92   : > { %p1912_p5 = pnand %p1911_p12, %p1905_p4 }
  0x94   : > { %1915 = shalt.err (!%p1912_p5)
}
  0x95   : > { %1654 = dma.hbm_to_vmem [thread:$0]  (!%p2380_p3), %s2376_s18, 256, %s304_s16, %s2247_s8, %s3164_s17, %s3164_s17, %s3163_s1  }
  0x96   : > { %315 = sbr.rel (%p2286_p13) target bundleno = 351 (0x15f), region = 40  ;;  %s2401_s21 = sand.u32 (!%p2286_p13), 1, %s2052_s25  }
  0x97   : > { %s1608_s11 = sshll.u32 (!%p2286_p13), %s2401_s21, 7  ;;  %s318_s29 = scalar_lea.sflag (!%p2286_p13), [#allocation4], %s2401_s21 }
  0x98   : > { %s2407_s23 = scalar_lea.vmem (!%p2286_p13), [#allocation3], %s1608_s11  ;;  %p3173_p11 = scmp.ne.s32.totalorder (!%p2286_p13), %s3157_s5, 0 }
  0x9b   : > { %1999 = dma.done.wait (%p3173_p11), %s318_s29, 2048  }
  0x9c   : > { %2001 = vsyncadd (%p3173_p11), %s318_s29, 4294965248  ;;  %s326_s8 = sand.u32 1, %s2271_s14   ;;  %s328_s9 = sand.u32 1, %s2040_s22  }
  0x9d   : > { %s2415_s1 = sshll.u32 %s328_s9, 4  ;;  %s327_s17 = scalar_lea.sflag [#allocation7], %s326_s8 }
  0x9e   : > { %s330_s16 = scalar_lea.vmem [#allocation6], %s2415_s1  ;;  %p3174_p13 = scmp.ne.s32.totalorder %s3148_s28, 0 }
  0xa0   : > { %2003 = dma.done.wait (%p3174_p13), %s327_s17, 256  }
  0xa1   : > { %2005 = vsyncadd (%p3174_p13), %s327_s17, 4294967040  ;;  %s337_s18 = sand.u32 1, %s2028_s19   ;;  %p3175_p12 = scmp.ne.s32.totalorder %s3167_s10, 0 }
  0xa2   : > { %s2423_s5 = sshll.u32 %s337_s18, 4 }
  0xa3   : > { %s339_s26 = scalar_lea.vmem [#allocation8], %s2423_s5 }
  0xa4   : > { %2007 = dma.done.wait (%p3175_p12), %s327_s17, 256  }
  0xa5   : > { %2009 = vsyncadd (%p3175_p12), %s327_s17, 4294967040  ;;  %p3176_p7 = scmp.eq.s32.totalorder %s2271_s14, 0 }
  0xa7   : > { %2011 = dma.done.wait (%p3176_p7), [#allocation10], 192   ;;  %p3177_p3 = pmov %p3176_p7 }
  0xa8   : > { %s3178_s28 = sld [smem:[#allocation19_spill]]  ;;  %v2086_v0 = vmov 0.0   ;;  %v427_v1 = vld [vmem:[%s2407_s23] sm:$0xff]  ;;  %v428_v2 = vld [vmem:[%s2407_s23 + $0x8] sm:$0xff]  ;;  %v429_v3 = vld [vmem:[%s2407_s23 + $0x10] sm:$0xff]  ;;  %vm574_vm0 = vcmask 1046528  }
  0xa9   : > { %2013 = vsyncadd (%p3177_p3), [#allocation10], 4294967104  ;;  %387 = vst [vmem:[#allocation2 + $0x18] sm:$0x1] %v2086_v0  ;;  %v430_v4 = vld [vmem:[%s2407_s23 + $0x18] sm:$0xff]  ;;  %v431_v5 = vld [vmem:[%s2407_s23 + $0x20] sm:$0xff] }
  0xaa   : > { %386 = vst [vmem:[#allocation2] sm:$0x1] %v2086_v0  ;;  %388 = vst [vmem:[#allocation2 + $0x30] sm:$0x1] %v2086_v0  ;;  %v432_v6 = vld [vmem:[%s2407_s23 + $0x28] sm:$0xff]  ;;  %v433_v7 = vld [vmem:[%s2407_s23 + $0x30] sm:$0xff] }
  0xab   : > { %389 = vst [vmem:[#allocation2 + $0x48] sm:$0x1] %v2086_v0  ;;  %390 = vst [vmem:[#allocation2 + $0x60] sm:$0x1] %v2086_v0  ;;  %v434_v8 = vld [vmem:[%s2407_s23 + $0x38] sm:$0xff]  ;;  %v435_v9 = vld [vmem:[%s2407_s23 + $0x40] sm:$0xff] }
  0xac   : > { %391 = vst [vmem:[#allocation2 + $0x78] sm:$0x1] %v2086_v0  ;;  %392 = vst [vmem:[#allocation2 + $0x90] sm:$0x1] %v2086_v0  ;;  %v436_v10 = vld [vmem:[%s2407_s23 + $0x48] sm:$0xff]  ;;  %v437_v11 = vld [vmem:[%s2407_s23 + $0x50] sm:$0xff] }
  0xad   : > { %393 = vst [vmem:[#allocation2 + $0xa8] sm:$0x1] %v2086_v0  ;;  %394 = vst [vmem:[#allocation2 + $0xc0] sm:$0x1] %v2086_v0  ;;  %v438_v12 = vld [vmem:[%s2407_s23 + $0x58] sm:$0xff]  ;;  %v439_v13 = vld [vmem:[%s2407_s23 + $0x60] sm:$0xff] }
  0xae   : > { %p410_p0 = scmp.gt.s32.totalorder %s3178_s28, 0  ;;  %p418_p1 = scmp.lt.s32.totalorder %s3178_s28, 1  ;;  %395 = vst [vmem:[#allocation2 + $0xd8] sm:$0x1] %v2086_v0  ;;  %396 = vst [vmem:[#allocation2 + $0x11] sm:$0x1] %v2086_v0 }
  0xaf   : > { %397 = vst [vmem:[#allocation2 + $0x29] sm:$0x1] %v2086_v0  ;;  %398 = vst [vmem:[#allocation2 + $0x41] sm:$0x1] %v2086_v0  ;;  %v440_v14 = vld [vmem:[%s2407_s23 + $0x68] sm:$0xff]  ;;  %v441_v15 = vld [vmem:[%s2407_s23 + $0x70] sm:$0xff] }
  0xb0   : > { %399 = vst [vmem:[#allocation2 + $0x59] sm:$0x1] %v2086_v0  ;;  %400 = vst [vmem:[#allocation2 + $0x71] sm:$0x1] %v2086_v0  ;;  %s2441_s14 = scalar_select %p410_p0, 255, 0 }
  0xb1   : > { %401 = vst [vmem:[#allocation2 + $0x89] sm:$0x1] %v2086_v0  ;;  %402 = vst [vmem:[#allocation2 + $0xa1] sm:$0x1] %v2086_v0  ;;  %s1790_s10 = scalar_select %p418_p1, 255, 0 }
  0xb2   : > { %403 = vst [vmem:[#allocation2 + $0xb9] sm:$0x1] %v2086_v0  ;;  %404 = vst [vmem:[#allocation2 + $0xd1] sm:$0x1] %v2086_v0  ;;  %v442_v16 = vld [vmem:[%s2407_s23 + $0x78] sm:$0xff]  ;;  %v1785_v17 = vld [vmem:[%s330_s16] sm:%s2441_s14] }
  0xb3   : > { %405 = vst [vmem:[#allocation2 + $0xe9] sm:$0x1] %v2086_v0  ;;  %444 = vst [vmem:[#allocation2 + $0x19] sm:$0xff] %v427_v1  ;;  %v1788_v18 = vld [vmem:[%s330_s16 + $0x8] sm:%s2441_s14]  ;;  %v1791_v19 = vld [vmem:[%s339_s26] sm:%s1790_s10]  ;;  %vm699_vm1 = vcmask 1045504  }
  0xb4   : > { %445 = vst [vmem:[#allocation2 + $0x21] sm:$0xff] %v428_v2  ;;  %446 = vst [vmem:[#allocation2 + $0x31] sm:$0xff] %v429_v3  ;;  %v1794_v20 = vld [vmem:[%s339_s26 + $0x8] sm:%s1790_s10]  ;;  %v2468_v21 = vld [vmem:[#allocation9] ss:$0 sm:$0xff]  ;;  %s3179_s2 = sld [smem:[#allocation30_spill]] }
  0xb5   : > { %447 = vst [vmem:[#allocation2 + $0x39] sm:$0xff] %v430_v4  ;;  %448 = vst [vmem:[#allocation2 + $0x49] sm:$0xff] %v431_v5  ;;  %v2470_v22 = vld [vmem:[#allocation9 + $0x1] ss:$0 sm:$0xff]  ;;  %v2472_v23 = vld [vmem:[#allocation9 + $0x2] ss:$0 sm:$0xff] }
  0xb6   : > { %449 = vst [vmem:[#allocation2 + $0x51] sm:$0xff] %v432_v6  ;;  %450 = vst [vmem:[#allocation2 + $0x61] sm:$0xff] %v433_v7  ;;  %v2474_v24 = vld [vmem:[#allocation9 + $0x4] ss:$0 sm:$0xff]  ;;  %v2476_v25 = vld [vmem:[#allocation9 + $0x5] ss:$0 sm:$0xff] }
  0xb7   : > { %451 = vst [vmem:[#allocation2 + $0x69] sm:$0xff] %v434_v8  ;;  %452 = vst [vmem:[#allocation2 + $0x79] sm:$0xff] %v435_v9  ;;  %v2478_v26 = vld [vmem:[#allocation9 + $0x6] ss:$0 sm:$0xff]  ;;  %v2488_v35 = vld [vmem:[#allocation9 + $0x8] ss:$0 sm:$0xff] }
  0xb8   : > { %453 = vst [vmem:[#allocation2 + $0x81] sm:$0xff] %v436_v10  ;;  %454 = vst [vmem:[#allocation2 + $0x91] sm:$0xff] %v437_v11  ;;  %v2490_v36 = vld [vmem:[#allocation9 + $0x9] ss:$0 sm:$0xff]  ;;  %v2503_v46 = vld [vmem:[#allocation9 + $0xa] ss:$0 sm:$0xff] }
  0xb9   : > { %455 = vst [vmem:[#allocation2 + $0x99] sm:$0xff] %v438_v12  ;;  %456 = vst [vmem:[#allocation2 + $0xa9] sm:$0xff] %v439_v13  ;;  %s2558_s3 = scalar_lea.vmem [#allocation11], %s1608_s11  ;;  %s3180_s29 = sld [smem:[#allocation20_spill]] }
  0xba   : > { %457 = vst [vmem:[#allocation2 + $0xb1] sm:$0xff] %v440_v14  ;;  %458 = vst [vmem:[#allocation2 + $0xc1] sm:$0xff] %v441_v15  ;;  %v481_v27 = vld [vmem:[#allocation2 + $0x18] sm:$0xff]  ;;  %v2519_v61 = vld [vmem:[%s3179_s2] ss:$0 sm:$0xff]  ;;  %s1624_s23 = sshll.u32 %s3178_s28, 4 }
  0xbb   : > { %459 = vst [vmem:[#allocation2 + $0xc9] sm:$0xff] %v442_v16  ;;  %416 = vst [vmem:[#allocation2 + $0x1] sm:$0xff] %v1785_v17  ;;  %v482_v28 = vld [vmem:[#allocation2 + $0x20] sm:$0xff]  ;;  %v2480_v29 = vld [vmem:[#allocation2 + $0x30] sm:$0xff]  ;;  %v508_v30 = vmul.f32 %v2468_v21, %v481_v27  ;;  %v529_v31 = vmul.f32 %v2470_v22, %v481_v27  ;;  %v654_v33 = vmul.f32 %v2472_v23, %v481_v27  ;;  %s1437_s1 = sshll.u32 %s2558_s3, 4  ;;  %s3181_s5 = sld [smem:[#allocation31_spill]]  ;;  %s3019_s1 = int_to_ptr.vmem [resolvable:$true] %s1437_s1 }
  0xbc   : > { %417 = vst [vmem:[#allocation2 + $0x9] sm:$0xff] %v1788_v18  ;;  %425 = vst [vmem:[#allocation2 + $0xd9] sm:$0xff] %v1791_v19  ;;  %v530_v32 = vmul.f32 %v2470_v22, %v482_v28  ;;  %v2486_v34 = vld [vmem:[#allocation2 + $0x38] sm:$0xff]  ;;  %v655_v37 = vmul.f32 %v2472_v23, %v482_v28  ;;  %v818_v38 = vmul.f32 %v2474_v24, %v2480_v29  ;;  %v2499_v41 = vld [vmem:[#allocation2 + $0x48] sm:$0xff]  ;;  %s1422_s28 = scalar_lea.sflag [#allocation5], %s2401_s21  ;;  %s1916_s14 = scalar_lea.vmem %s3019_s1, 2048 }
  0xbd   : > { %426 = vst [vmem:[#allocation2 + $0xe1] sm:$0xff] %v1794_v20  ;;  %v839_v39 = vmul.f32 %v2476_v25, %v2480_v29  ;;  %v840_v40 = vmul.f32 %v2476_v25, %v2486_v34  ;;  %v580_v42 = vrot.slane %v529_v31, 1  ;;  %v705_v44 = vrot.slane %v654_v33, 2  ;;  %v2507_v51 = vld [vmem:[#allocation2 + $0x50] sm:$0xff]  ;;  %v483_v60 = vld [vmem:[#allocation2 + $0x28] sm:$0x3]  ;;  %p1917_p2 = scmp.ne.s32.totalorder %s3019_s1, %s1916_s14 }
  0xbe   : > { %v581_v43 = vrot.slane %v530_v32, 1  ;;  %v963_v45 = vmul.f32 %v2478_v26, %v2480_v29  ;;  %v706_v47 = vrot.slane %v655_v37, 2  ;;  %v964_v50 = vmul.f32 %v2478_v26, %v2486_v34  ;;  %v793_v6 = vld [vmem:[#allocation2 + $0x40] sm:$0x3]  ;;  %v1102_v19 = vld [vmem:[#allocation2 + $0x58] sm:$0x3] }
  0xbf   : > { %v889_v48 = vrot.slane %v839_v39, 1  ;;  %v890_v49 = vrot.slane %v840_v40, 1  ;;  %v1127_v54 = vmul.f32 %v2488_v35, %v2499_v41  ;;  %v1148_v55 = vmul.f32 %v2490_v36, %v2499_v41  ;;  %s1625_s8 = sshll.u32 %s3180_s29, 5  ;;  %p3182_p10 = scmp.ne.s32.totalorder %s3156_s7, 0 }
  0xc0   : > { %v582_v52 = vsel %vm574_vm0, %v580_v42, %v581_v43  ;;  %v1013_v53 = vrot.slane %v963_v45, 2  ;;  %v707_v57 = vsel %vm699_vm1, %v705_v44, %v706_v47  ;;  %v1014_v59 = vrot.slane %v964_v50, 2  ;;  %s1434_s9 = sadd.s32 %s1625_s8, %s1624_s23  ;;  %s2087_s10 = smov [#allocation11]  }
  0xc1   : > { %v633_v56 = vadd.f32 %v582_v52, %v508_v30  ;;  %v891_v58 = vsel %vm574_vm0, %v889_v48, %v890_v49  ;;  %v1149_v63 = vmul.f32 %v2490_v36, %v2507_v51  ;;  %v1198_v0 = vrot.slane %v1148_v55, 1  ;;  %s1626_s17 = sshll.u32 %s1434_s9, 7  ;;  %p1918_p6 = pnand %p1917_p2, %p3182_p10 }
  0xc2   : > { %v942_v62 = vadd.f32 %v891_v58, %v818_v38  ;;  %v1272_v1 = vmul.f32 %v2503_v46, %v2499_v41  ;;  %v1015_v3 = vsel %vm699_vm1, %v1013_v53, %v1014_v59  ;;  %v1273_v4 = vmul.f32 %v2503_v46, %v2507_v51  ;;  %s3024_s26 = scalar_lea.hbm %s3181_s5, %s1626_s17  ;;  %s1920_s12 = sshll.u32 %s2087_s10, 4  ;;  %s1921_s12 = int_to_ptr.vmem [resolvable:$false] %s1920_s12 }
  0xc3   : > { %v758_v2 = vadd.f32 %v707_v57, %v633_v56  ;;  %v509_v5 = vmul.f32 %v2468_v21, %v482_v28  ;;  %v1199_v8 = vrot.slane %v1149_v63, 1  ;;  %v531_v10 = vmul.f32 %v2470_v22, %v483_v60  ;;  %p1919_p9 = pneg %p1918_p6  ;;  %s1922_s15 = scalar_lea.vmem %s1921_s12, 4096 }
  0xc4   : > { %v1066_v7 = vadd.f32 %v1015_v3, %v942_v62  ;;  %v1322_v9 = vrot.slane %v1272_v1, 2  ;;  %v1323_v12 = vrot.slane %v1273_v4, 2  ;;  %v656_v13 = vmul.f32 %v2472_v23, %v483_v60  ;;  %p1923_p8 = scmp.lt.s32.totalorder %s3019_s1, %s1921_s12  ;;  %p1924_p4 = scmp.lt.s32.totalorder %s1922_s15, %s1916_s14 }
  0xc5   : > { %v774_v11 = vadd.f32 %v2519_v61, %v758_v2  ;;  %v819_v14 = vmul.f32 %v2474_v24, %v2486_v34  ;;  %v1200_v15 = vsel %vm574_vm0, %v1198_v0, %v1199_v8  ;;  %v583_v16 = vrot.slane %v531_v10, 1 }
  0xc6   : > { %v841_v17 = vmul.f32 %v2476_v25, %v793_v6  ;;  %v965_v18 = vmul.f32 %v2478_v26, %v793_v6  ;;  %v1251_v27 = vadd.f32 %v1200_v15, %v1127_v54  ;;  %v1324_v28 = vsel %vm699_vm1, %v1322_v9, %v1323_v12  ;;  %p1925_p5 = por %p1924_p4, %p1923_p8 }
  0xc7   : > { %v1082_v20 = vadd.f32 %v1066_v7, %v774_v11  ;;  %v708_v30 = vrot.slane %v656_v13, 2  ;;  %v584_v31 = vsel %vm574_vm0, %v581_v43, %v583_v16  ;;  %v1128_v37 = vmul.f32 %v2488_v35, %v2507_v51 }
  0xc8   : > { %v892_v32 = vrot.slane %v841_v17, 1  ;;  %v1016_v33 = vrot.slane %v965_v18, 2  ;;  %v1375_v38 = vadd.f32 %v1324_v28, %v1251_v27  ;;  %v634_v39 = vadd.f32 %v584_v31, %v509_v5  ;;  %v2572_v5 = vld [vmem:[#allocation2 + $0x60] sm:$0xff]  ;;  %p1926_p11 = pnand %p1925_p5, %p1919_p9 }
  0xc9   : > { %v709_v40 = vsel %vm699_vm1, %v706_v47, %v708_v30  ;;  %v1150_v42 = vmul.f32 %v2490_v36, %v1102_v19  ;;  %v1274_v48 = vmul.f32 %v2503_v46, %v1102_v19  ;;  %v510_v43 = vmul.f32 %v2468_v21, %v2480_v29 }
  0xca   : > { %v893_v44 = vsel %vm574_vm0, %v890_v49, %v892_v32  ;;  %v1017_v45 = vsel %vm699_vm1, %v1014_v59, %v1016_v33  ;;  %v1391_v50 = vadd.f32 %v1375_v38, %v1082_v20  ;;  %v759_v52 = vadd.f32 %v709_v40, %v634_v39 }
  0xcb   : > { %v943_v53 = vadd.f32 %v893_v44, %v819_v14  ;;  %v1201_v54 = vrot.slane %v1150_v42, 1  ;;  %v1325_v55 = vrot.slane %v1274_v48, 2  ;;  %v532_v56 = vmul.f32 %v2470_v22, %v2480_v29  ;;  %v2584_v14 = vld [vmem:[#allocation2 + $0x68] sm:$0xff]  ;;  %v796_v44 = vld [vmem:[#allocation2 + $0x58] sm:$0x3] }
  0xcc   : > { %v2552_v47 = vmul.f32 %v2470_v22, %v2486_v34  ;;  %v657_v49 = vmul.f32 %v2472_v23, %v2480_v29  ;;  %1407 = vst [vmem:[%s2558_s3 + $0x10] sm:$0xff] %v1391_v50  ;;  %v775_v57 = vadd.f32 %v2519_v61, %v759_v52  ;;  %v2565_v60 = vmul.f32 %v2472_v23, %v2486_v34 }
  0xcd   : > { %v1067_v58 = vadd.f32 %v1017_v45, %v943_v53  ;;  %v1202_v59 = vsel %vm574_vm0, %v1199_v8, %v1201_v54  ;;  %v1326_v63 = vsel %vm699_vm1, %v1323_v12, %v1325_v55  ;;  %v585_v0 = vrot.slane %v532_v56, 1  ;;  %v1105_v56 = vld [vmem:[#allocation2 + $0x70] sm:$0x3] }
  0xce   : > { %v1252_v62 = vadd.f32 %v1202_v59, %v1128_v37  ;;  %v586_v29 = vrot.slane %v2552_v47, 1  ;;  %v710_v2 = vrot.slane %v657_v49, 2  ;;  %v711_v3 = vrot.slane %v2565_v60, 2  ;;  %v486_v37 = vld [vmem:[#allocation2 + $0x40] sm:$0x3] }
  0xcf   : > { %v1083_v1 = vadd.f32 %v1067_v58, %v775_v57  ;;  %v820_v4 = vmul.f32 %v2474_v24, %v2499_v41  ;;  %v842_v8 = vmul.f32 %v2476_v25, %v2499_v41  ;;  %v843_v9 = vmul.f32 %v2476_v25, %v2507_v51 }
  0xd0   : > { %v1376_v6 = vadd.f32 %v1326_v63, %v1252_v62  ;;  %v587_v7 = vsel %vm574_vm0, %v585_v0, %v586_v29  ;;  %v712_v11 = vsel %vm699_vm1, %v710_v2, %v711_v3  ;;  %v966_v12 = vmul.f32 %v2478_v26, %v2499_v41 }
  0xd1   : > { %v635_v10 = vadd.f32 %v587_v7, %v510_v43  ;;  %v967_v13 = vmul.f32 %v2478_v26, %v2507_v51  ;;  %v894_v16 = vrot.slane %v842_v8, 1  ;;  %v895_v17 = vrot.slane %v843_v9, 1 }
  0xd2   : > { %v1392_v15 = vadd.f32 %v1376_v6, %v1083_v1  ;;  %v1129_v18 = vmul.f32 %v2488_v35, %v2572_v5  ;;  %v1018_v20 = vrot.slane %v966_v12, 2  ;;  %v1151_v28 = vmul.f32 %v2490_v36, %v2572_v5 }
  0xd3   : > { %v760_v19 = vadd.f32 %v712_v11, %v635_v10  ;;  %v1019_v27 = vrot.slane %v967_v13, 2  ;;  %v896_v30 = vsel %vm574_vm0, %v894_v16, %v895_v17  ;;  %v1152_v31 = vmul.f32 %v2490_v36, %v2584_v14 }
  0xd4   : > { %1408 = vst [vmem:[%s2558_s3 + $0x18] sm:$0xff] %v1392_v15  ;;  %v1275_v32 = vmul.f32 %v2503_v46, %v2572_v5  ;;  %v1276_v33 = vmul.f32 %v2503_v46, %v2584_v14  ;;  %v944_v39 = vadd.f32 %v896_v30, %v820_v4  ;;  %v1203_v42 = vrot.slane %v1151_v28, 1 }
  0xd5   : > { %v776_v38 = vadd.f32 %v2519_v61, %v760_v19  ;;  %v1020_v40 = vsel %vm699_vm1, %v1018_v20, %v1019_v27  ;;  %v1204_v45 = vrot.slane %v1152_v31, 1  ;;  %v511_v50 = vmul.f32 %v2468_v21, %v2486_v34 }
  0xd6   : > { %v1327_v48 = vrot.slane %v1275_v32, 2  ;;  %v1328_v43 = vrot.slane %v1276_v33, 2  ;;  %v1068_v52 = vadd.f32 %v1020_v40, %v944_v39  ;;  %v534_v53 = vmul.f32 %v2470_v22, %v486_v37 }
  0xd7   : > { %v659_v54 = vmul.f32 %v2472_v23, %v486_v37  ;;  %v821_v55 = vmul.f32 %v2474_v24, %v2507_v51  ;;  %v1205_v47 = vsel %vm574_vm0, %v1203_v42, %v1204_v45  ;;  %v844_v57 = vmul.f32 %v2476_v25, %v796_v44 }
  0xd8   : > { %v1329_v49 = vsel %vm699_vm1, %v1327_v48, %v1328_v43  ;;  %v968_v58 = vmul.f32 %v2478_v26, %v796_v44  ;;  %v1084_v59 = vadd.f32 %v1068_v52, %v776_v38  ;;  %v1253_v60 = vadd.f32 %v1205_v47, %v1129_v18  ;;  %v2639_v44 = vld [vmem:[#allocation2 + $0x78] sm:$0xff] }
  0xd9   : > { %v588_v34 = vrot.slane %v534_v53, 1  ;;  %v713_v62 = vrot.slane %v659_v54, 2  ;;  %v897_v63 = vrot.slane %v844_v57, 1  ;;  %v1130_v1 = vmul.f32 %v2488_v35, %v2584_v14 }
  0xda   : > { %v1021_v0 = vrot.slane %v968_v58, 2  ;;  %v1153_v2 = vmul.f32 %v2490_v36, %v1105_v56  ;;  %v1377_v4 = vadd.f32 %v1329_v49, %v1253_v60  ;;  %v1277_v8 = vmul.f32 %v2503_v46, %v1105_v56 }
  0xdb   : > { %v589_v6 = vsel %vm574_vm0, %v586_v29, %v588_v34  ;;  %v714_v7 = vsel %vm699_vm1, %v711_v3, %v713_v62  ;;  %v898_v10 = vsel %vm574_vm0, %v895_v17, %v897_v63  ;;  %v512_v18 = vmul.f32 %v2468_v21, %v2499_v41 }
  0xdc   : > { %v636_v9 = vadd.f32 %v589_v6, %v511_v50  ;;  %v1022_v11 = vsel %vm699_vm1, %v1019_v27, %v1021_v0  ;;  %v1206_v12 = vrot.slane %v1153_v2, 1  ;;  %v1393_v13 = vadd.f32 %v1377_v4, %v1084_v59  ;;  %v489_v2 = vld [vmem:[#allocation2 + $0x58] sm:$0x3] }
  0xdd   : > { %v945_v15 = vadd.f32 %v898_v10, %v821_v55  ;;  %v1330_v16 = vrot.slane %v1277_v8, 2  ;;  %v535_v29 = vmul.f32 %v2470_v22, %v2499_v41  ;;  %v2625_v3 = vmul.f32 %v2470_v22, %v2507_v51  ;;  %v2648_v55 = vld [vmem:[#allocation2 + $0x80] sm:$0xff] }
  0xde   : > { %v761_v19 = vadd.f32 %v714_v7, %v636_v9  ;;  %v1207_v20 = vsel %vm574_vm0, %v1204_v45, %v1206_v12  ;;  %1409 = vst [vmem:[%s2558_s3 + $0x20] sm:$0xff] %v1393_v13  ;;  %v660_v30 = vmul.f32 %v2472_v23, %v2499_v41  ;;  %v661_v37 = vmul.f32 %v2472_v23, %v2507_v51  ;;  %v799_v9 = vld [vmem:[#allocation2 + $0x70] sm:$0x3] }
  0xdf   : > { %v1069_v17 = vadd.f32 %v1022_v11, %v945_v15  ;;  %v1254_v27 = vadd.f32 %v1207_v20, %v1130_v1  ;;  %v1331_v28 = vsel %vm699_vm1, %v1328_v43, %v1330_v16  ;;  %v590_v32 = vrot.slane %v535_v29, 1  ;;  %v1108_v20 = vld [vmem:[#allocation2 + $0x88] sm:$0x3] }
  0xe0   : > { %v777_v31 = vadd.f32 %v2519_v61, %v761_v19  ;;  %v591_v33 = vrot.slane %v2625_v3, 1  ;;  %v715_v39 = vrot.slane %v660_v30, 2  ;;  %v822_v40 = vmul.f32 %v2474_v24, %v2572_v5 }
  0xe1   : > { %v1378_v38 = vadd.f32 %v1331_v28, %v1254_v27  ;;  %v845_v42 = vmul.f32 %v2476_v25, %v2572_v5  ;;  %v716_v48 = vrot.slane %v661_v37, 2  ;;  %v846_v43 = vmul.f32 %v2476_v25, %v2584_v14 }
  0xe2   : > { %v1085_v45 = vadd.f32 %v1069_v17, %v777_v31  ;;  %v592_v41 = vsel %vm574_vm0, %v590_v32, %v591_v33  ;;  %v969_v53 = vmul.f32 %v2478_v26, %v2572_v5  ;;  %v970_v54 = vmul.f32 %v2478_v26, %v2584_v14 }
  0xe3   : > { %v637_v50 = vadd.f32 %v592_v41, %v512_v18  ;;  %v899_v52 = vrot.slane %v845_v42, 1  ;;  %v717_v47 = vsel %vm699_vm1, %v715_v39, %v716_v48  ;;  %v900_v49 = vrot.slane %v846_v43, 1 }
  0xe4   : > { %v1394_v56 = vadd.f32 %v1378_v38, %v1085_v45  ;;  %v1131_v57 = vmul.f32 %v2488_v35, %v2639_v44  ;;  %v1023_v59 = vrot.slane %v969_v53, 2  ;;  %v1024_v60 = vrot.slane %v970_v54, 2 }
  0xe5   : > { %v762_v58 = vadd.f32 %v717_v47, %v637_v50  ;;  %v1154_v34 = vmul.f32 %v2490_v36, %v2639_v44  ;;  %v901_v62 = vsel %vm574_vm0, %v899_v52, %v900_v49  ;;  %v1155_v63 = vmul.f32 %v2490_v36, %v2648_v55 }
  0xe6   : > { %1410 = vst [vmem:[%s2558_s3 + $0x28] sm:$0xff] %v1394_v56  ;;  %v1278_v0 = vmul.f32 %v2503_v46, %v2639_v44  ;;  %v1279_v1 = vmul.f32 %v2503_v46, %v2648_v55  ;;  %v946_v6 = vadd.f32 %v901_v62, %v822_v40  ;;  %v1025_v7 = vsel %vm699_vm1, %v1023_v59, %v1024_v60 }
  0xe7   : > { %v778_v4 = vadd.f32 %v2519_v61, %v762_v58  ;;  %v1208_v8 = vrot.slane %v1154_v34, 1  ;;  %v1209_v10 = vrot.slane %v1155_v63, 1  ;;  %v513_v13 = vmul.f32 %v2468_v21, %v2507_v51 }
  0xe8   : > { %v1332_v11 = vrot.slane %v1278_v0, 2  ;;  %v1333_v12 = vrot.slane %v1279_v1, 2  ;;  %v1070_v15 = vadd.f32 %v1025_v7, %v946_v6  ;;  %v537_v16 = vmul.f32 %v2470_v22, %v489_v2 }
  0xe9   : > { %v662_v18 = vmul.f32 %v2472_v23, %v489_v2  ;;  %v823_v19 = vmul.f32 %v2474_v24, %v2584_v14  ;;  %v1210_v29 = vsel %vm574_vm0, %v1208_v8, %v1209_v10  ;;  %v847_v17 = vmul.f32 %v2476_v25, %v799_v9 }
  0xea   : > { %v1334_v3 = vsel %vm699_vm1, %v1332_v11, %v1333_v12  ;;  %v971_v27 = vmul.f32 %v2478_v26, %v799_v9  ;;  %v1086_v28 = vadd.f32 %v1070_v15, %v778_v4  ;;  %v1255_v30 = vadd.f32 %v1210_v29, %v1131_v57  ;;  %v2704_v9 = vld [vmem:[#allocation2 + $0x90] sm:$0xff] }
  0xeb   : > { %v593_v51 = vrot.slane %v537_v16, 1  ;;  %v718_v31 = vrot.slane %v662_v18, 2  ;;  %v902_v32 = vrot.slane %v847_v17, 1  ;;  %v1132_v38 = vmul.f32 %v2488_v35, %v2648_v55 }
  0xec   : > { %v1026_v37 = vrot.slane %v971_v27, 2  ;;  %v1156_v39 = vmul.f32 %v2490_v36, %v1108_v20  ;;  %v1379_v40 = vadd.f32 %v1334_v3, %v1255_v30  ;;  %v1280_v41 = vmul.f32 %v2503_v46, %v1108_v20 }
  0xed   : > { %v594_v42 = vsel %vm574_vm0, %v591_v33, %v593_v51  ;;  %v719_v45 = vsel %vm699_vm1, %v716_v48, %v718_v31  ;;  %v903_v50 = vsel %vm574_vm0, %v900_v49, %v902_v32  ;;  %v514_v57 = vmul.f32 %v2468_v21, %v2572_v5 }
  0xee   : > { %v638_v43 = vadd.f32 %v594_v42, %v513_v13  ;;  %v1027_v52 = vsel %vm699_vm1, %v1024_v60, %v1026_v37  ;;  %v1211_v53 = vrot.slane %v1156_v39, 1  ;;  %v1395_v54 = vadd.f32 %v1379_v40, %v1086_v28  ;;  %v492_v39 = vld [vmem:[#allocation2 + $0x70] sm:$0x3] }
  0xef   : > { %v947_v56 = vadd.f32 %v903_v50, %v823_v19  ;;  %v1335_v47 = vrot.slane %v1280_v41, 2  ;;  %v538_v33 = vmul.f32 %v2470_v22, %v2572_v5  ;;  %v2690_v48 = vmul.f32 %v2470_v22, %v2584_v14  ;;  %v2713_v19 = vld [vmem:[#allocation2 + $0x98] sm:$0xff] }
  0xf0   : > { %v763_v58 = vadd.f32 %v719_v45, %v638_v43  ;;  %v1212_v59 = vsel %vm574_vm0, %v1209_v10, %v1211_v53  ;;  %1411 = vst [vmem:[%s2558_s3 + $0x30] sm:$0xff] %v1395_v54  ;;  %v663_v62 = vmul.f32 %v2472_v23, %v2572_v5  ;;  %v664_v2 = vmul.f32 %v2472_v23, %v2584_v14  ;;  %v802_v43 = vld [vmem:[#allocation2 + $0x88] sm:$0x3] }
  0xf1   : > { %v1071_v49 = vadd.f32 %v1027_v52, %v947_v56  ;;  %v1256_v60 = vadd.f32 %v1212_v59, %v1132_v38  ;;  %v1336_v34 = vsel %vm699_vm1, %v1333_v12, %v1335_v47  ;;  %v595_v0 = vrot.slane %v538_v33, 1  ;;  %v1111_v59 = vld [vmem:[#allocation2 + $0xa0] sm:$0x3] }
  0xf2   : > { %v779_v63 = vadd.f32 %v2519_v61, %v763_v58  ;;  %v596_v1 = vrot.slane %v2690_v48, 1  ;;  %v720_v6 = vrot.slane %v663_v62, 2  ;;  %v824_v7 = vmul.f32 %v2474_v24, %v2639_v44 }
  0xf3   : > { %v1380_v4 = vadd.f32 %v1336_v34, %v1256_v60  ;;  %v848_v8 = vmul.f32 %v2476_v25, %v2639_v44  ;;  %v721_v11 = vrot.slane %v664_v2, 2  ;;  %v849_v12 = vmul.f32 %v2476_v25, %v2648_v55 }
  0xf4   : > { %v1087_v10 = vadd.f32 %v1071_v49, %v779_v63  ;;  %v597_v5 = vsel %vm574_vm0, %v595_v0, %v596_v1  ;;  %v972_v16 = vmul.f32 %v2478_v26, %v2639_v44  ;;  %v973_v18 = vmul.f32 %v2478_v26, %v2648_v55 }
  0xf5   : > { %v639_v13 = vadd.f32 %v597_v5, %v514_v57  ;;  %v904_v15 = vrot.slane %v848_v8, 1  ;;  %v722_v29 = vsel %vm699_vm1, %v720_v6, %v721_v11  ;;  %v905_v3 = vrot.slane %v849_v12, 1 }
  0xf6   : > { %v1396_v20 = vadd.f32 %v1380_v4, %v1087_v10  ;;  %v1133_v17 = vmul.f32 %v2488_v35, %v2704_v9  ;;  %v1028_v28 = vrot.slane %v972_v16, 2  ;;  %v1029_v30 = vrot.slane %v973_v18, 2 }
  0xf7   : > { %v764_v27 = vadd.f32 %v722_v29, %v639_v13  ;;  %v1157_v51 = vmul.f32 %v2490_v36, %v2704_v9  ;;  %v906_v31 = vsel %vm574_vm0, %v904_v15, %v905_v3  ;;  %v1158_v32 = vmul.f32 %v2490_v36, %v2713_v19 }
  0xf8   : > { %1412 = vst [vmem:[%s2558_s3 + $0x38] sm:$0xff] %v1396_v20  ;;  %v1281_v37 = vmul.f32 %v2503_v46, %v2704_v9  ;;  %v1282_v38 = vmul.f32 %v2503_v46, %v2713_v19  ;;  %v948_v42 = vadd.f32 %v906_v31, %v824_v7  ;;  %v1030_v45 = vsel %vm699_vm1, %v1028_v28, %v1029_v30 }
  0xf9   : > { %v780_v40 = vadd.f32 %v2519_v61, %v764_v27  ;;  %v1213_v41 = vrot.slane %v1157_v51, 1  ;;  %v1214_v50 = vrot.slane %v1158_v32, 1  ;;  %v515_v54 = vmul.f32 %v2468_v21, %v2584_v14 }
  0xfa   : > { %v1337_v52 = vrot.slane %v1281_v37, 2  ;;  %v1338_v53 = vrot.slane %v1282_v38, 2  ;;  %v1072_v56 = vadd.f32 %v1030_v45, %v948_v42  ;;  %v540_v47 = vmul.f32 %v2470_v22, %v492_v39 }
  0xfb   : > { %v665_v57 = vmul.f32 %v2472_v23, %v492_v39  ;;  %v825_v58 = vmul.f32 %v2474_v24, %v2648_v55  ;;  %v1215_v33 = vsel %vm574_vm0, %v1213_v41, %v1214_v50  ;;  %v850_v49 = vmul.f32 %v2476_v25, %v802_v43 }
  0xfc   : > { %v1339_v48 = vsel %vm699_vm1, %v1337_v52, %v1338_v53  ;;  %v974_v60 = vmul.f32 %v2478_v26, %v802_v43  ;;  %v1088_v34 = vadd.f32 %v1072_v56, %v780_v40  ;;  %v1257_v62 = vadd.f32 %v1215_v33, %v1133_v17  ;;  %v2769_v43 = vld [vmem:[#allocation2 + $0xa8] sm:$0xff] }
  0xfd   : > { %v598_v14 = vrot.slane %v540_v47, 1  ;;  %v723_v63 = vrot.slane %v665_v57, 2  ;;  %v907_v0 = vrot.slane %v850_v49, 1  ;;  %v1134_v4 = vmul.f32 %v2488_v35, %v2713_v19 }
  0xfe   : > { %v1031_v2 = vrot.slane %v974_v60, 2  ;;  %v1159_v6 = vmul.f32 %v2490_v36, %v1111_v59  ;;  %v1381_v7 = vadd.f32 %v1339_v48, %v1257_v62  ;;  %v1283_v5 = vmul.f32 %v2503_v46, %v1111_v59 }
  0xff   : > { %v599_v8 = vsel %vm574_vm0, %v596_v1, %v598_v14  ;;  %v724_v10 = vsel %vm699_vm1, %v721_v11, %v723_v63  ;;  %v908_v13 = vsel %vm574_vm0, %v905_v3, %v907_v0  ;;  %v516_v17 = vmul.f32 %v2468_v21, %v2639_v44 }
 0x100   : > { %v640_v12 = vadd.f32 %v599_v8, %v515_v54  ;;  %v1032_v15 = vsel %vm699_vm1, %v1029_v30, %v1031_v2  ;;  %v1216_v16 = vrot.slane %v1159_v6, 1  ;;  %v1397_v18 = vadd.f32 %v1381_v7, %v1088_v34  ;;  %v495_v6 = vld [vmem:[#allocation2 + $0x88] sm:$0x3] }
 0x101   : > { %v949_v20 = vadd.f32 %v908_v13, %v825_v58  ;;  %v1340_v29 = vrot.slane %v1283_v5, 2  ;;  %v541_v1 = vmul.f32 %v2470_v22, %v2639_v44  ;;  %v2755_v11 = vmul.f32 %v2470_v22, %v2648_v55  ;;  %v2778_v58 = vld [vmem:[#allocation2 + $0xb0] sm:$0xff] }
 0x102   : > { %v765_v27 = vadd.f32 %v724_v10, %v640_v12  ;;  %v1217_v28 = vsel %vm574_vm0, %v1214_v50, %v1216_v16  ;;  %1413 = vst [vmem:[%s2558_s3 + $0x40] sm:$0xff] %v1397_v18  ;;  %v666_v31 = vmul.f32 %v2472_v23, %v2639_v44  ;;  %v667_v39 = vmul.f32 %v2472_v23, %v2648_v55  ;;  %v805_v12 = vld [vmem:[#allocation2 + $0xa0] sm:$0x3] }
 0x103   : > { %v1073_v3 = vadd.f32 %v1032_v15, %v949_v20  ;;  %v1258_v30 = vadd.f32 %v1217_v28, %v1134_v4  ;;  %v1341_v51 = vsel %vm699_vm1, %v1338_v53, %v1340_v29  ;;  %v600_v37 = vrot.slane %v541_v1, 1  ;;  %v1114_v28 = vld [vmem:[#allocation2 + $0xb8] sm:$0x3] }
 0x104   : > { %v781_v32 = vadd.f32 %v2519_v61, %v765_v27  ;;  %v601_v38 = vrot.slane %v2755_v11, 1  ;;  %v725_v42 = vrot.slane %v666_v31, 2  ;;  %v826_v45 = vmul.f32 %v2474_v24, %v2704_v9 }
 0x105   : > { %v1382_v40 = vadd.f32 %v1341_v51, %v1258_v30  ;;  %v851_v41 = vmul.f32 %v2476_v25, %v2704_v9  ;;  %v726_v52 = vrot.slane %v667_v39, 2  ;;  %v852_v53 = vmul.f32 %v2476_v25, %v2713_v19 }
 0x106   : > { %v1089_v50 = vadd.f32 %v1073_v3, %v781_v32  ;;  %v602_v44 = vsel %vm574_vm0, %v600_v37, %v601_v38  ;;  %v975_v47 = vmul.f32 %v2478_v26, %v2704_v9  ;;  %v976_v57 = vmul.f32 %v2478_v26, %v2713_v19 }
 0x107   : > { %v641_v54 = vadd.f32 %v602_v44, %v516_v17  ;;  %v909_v56 = vrot.slane %v851_v41, 1  ;;  %v727_v33 = vsel %vm699_vm1, %v725_v42, %v726_v52  ;;  %v910_v48 = vrot.slane %v852_v53, 1 }
 0x108   : > { %v1398_v59 = vadd.f32 %v1382_v40, %v1089_v50  ;;  %v1135_v49 = vmul.f32 %v2488_v35, %v2769_v43  ;;  %v1033_v34 = vrot.slane %v975_v47, 2  ;;  %v1034_v62 = vrot.slane %v976_v57, 2 }
 0x109   : > { %v766_v60 = vadd.f32 %v727_v33, %v641_v54  ;;  %v1160_v14 = vmul.f32 %v2490_v36, %v2769_v43  ;;  %v911_v63 = vsel %vm574_vm0, %v909_v56, %v910_v48  ;;  %v1161_v0 = vmul.f32 %v2490_v36, %v2778_v58 }
 0x10a   : > { %1414 = vst [vmem:[%s2558_s3 + $0x48] sm:$0xff] %v1398_v59  ;;  %v1284_v2 = vmul.f32 %v2503_v46, %v2769_v43  ;;  %v1285_v4 = vmul.f32 %v2503_v46, %v2778_v58  ;;  %v950_v8 = vadd.f32 %v911_v63, %v826_v45  ;;  %v1035_v10 = vsel %vm699_vm1, %v1033_v34, %v1034_v62 }
 0x10b   : > { %v782_v7 = vadd.f32 %v2519_v61, %v766_v60  ;;  %v1218_v5 = vrot.slane %v1160_v14, 1  ;;  %v1219_v13 = vrot.slane %v1161_v0, 1  ;;  %v517_v18 = vmul.f32 %v2468_v21, %v2648_v55 }
 0x10c   : > { %v1342_v15 = vrot.slane %v1284_v2, 2  ;;  %v1343_v16 = vrot.slane %v1285_v4, 2  ;;  %v1074_v20 = vadd.f32 %v1035_v10, %v950_v8  ;;  %v543_v29 = vmul.f32 %v2470_v22, %v495_v6 }
 0x10d   : > { %v668_v17 = vmul.f32 %v2472_v23, %v495_v6  ;;  %v827_v27 = vmul.f32 %v2474_v24, %v2713_v19  ;;  %v1220_v1 = vsel %vm574_vm0, %v1218_v5, %v1219_v13  ;;  %v853_v3 = vmul.f32 %v2476_v25, %v805_v12 }
 0x10e   : > { %v1344_v11 = vsel %vm699_vm1, %v1342_v15, %v1343_v16  ;;  %v977_v30 = vmul.f32 %v2478_v26, %v805_v12  ;;  %v1090_v51 = vadd.f32 %v1074_v20, %v782_v7  ;;  %v1259_v31 = vadd.f32 %v1220_v1, %v1135_v49 }
 0x10f   : > { %v603_v55 = vrot.slane %v543_v29, 1  ;;  %v728_v32 = vrot.slane %v668_v17, 2  ;;  %v912_v37 = vrot.slane %v853_v3, 1  ;;  %v1136_v40 = vmul.f32 %v2488_v35, %v2778_v58 }
 0x110   : > { %v1036_v39 = vrot.slane %v977_v30, 2  ;;  %v1162_v42 = vmul.f32 %v2490_v36, %v1114_v28  ;;  %v1383_v45 = vadd.f32 %v1344_v11, %v1259_v31  ;;  %v1286_v44 = vmul.f32 %v2503_v46, %v1114_v28 }
 0x111   : > { %v604_v41 = vsel %vm574_vm0, %v601_v38, %v603_v55  ;;  %v729_v50 = vsel %vm699_vm1, %v726_v52, %v728_v32  ;;  %v913_v54 = vsel %vm574_vm0, %v910_v48, %v912_v37  ;;  %v518_v49 = vmul.f32 %v2468_v21, %v2704_v9 }
 0x112   : > { %v642_v53 = vadd.f32 %v604_v41, %v517_v18  ;;  %v1037_v56 = vsel %vm699_vm1, %v1034_v62, %v1036_v39  ;;  %v1221_v47 = vrot.slane %v1162_v42, 1  ;;  %v1399_v57 = vadd.f32 %v1383_v45, %v1090_v51  ;;  %v498_v42 = vld [vmem:[#allocation2 + $0xa0] sm:$0x3] }
 0x113   : > { %v951_v59 = vadd.f32 %v913_v54, %v827_v27  ;;  %v1345_v33 = vrot.slane %v1286_v44, 2  ;;  %v544_v38 = vmul.f32 %v2470_v22, %v2704_v9  ;;  %v2820_v52 = vmul.f32 %v2470_v22, %v2713_v19  ;;  %v2843_v27 = vld [vmem:[#allocation2 + $0xc8] sm:$0xff] }
 0x114   : > { %v767_v60 = vadd.f32 %v729_v50, %v642_v53  ;;  %v1222_v34 = vsel %vm574_vm0, %v1219_v13, %v1221_v47  ;;  %1415 = vst [vmem:[%s2558_s3 + $0x50] sm:$0xff] %v1399_v57  ;;  %v669_v63 = vmul.f32 %v2472_v23, %v2704_v9  ;;  %v670_v6 = vmul.f32 %v2472_v23, %v2713_v19  ;;  %v808_v53 = vld [vmem:[#allocation2 + $0xb8] sm:$0x3] }
 0x115   : > { %v1075_v48 = vadd.f32 %v1037_v56, %v951_v59  ;;  %v1260_v62 = vadd.f32 %v1222_v34, %v1136_v40  ;;  %v1346_v14 = vsel %vm699_vm1, %v1343_v16, %v1345_v33  ;;  %v605_v2 = vrot.slane %v544_v38, 1  ;;  %v2837_v16 = vld [vmem:[#allocation2 + $0xc0] sm:$0xff]  ;;  %v1117_v34 = vld [vmem:[#allocation2 + $0xd0] sm:$0x3] }
 0x116   : > { %v783_v0 = vadd.f32 %v2519_v61, %v767_v60  ;;  %v606_v4 = vrot.slane %v2820_v52, 1  ;;  %v730_v8 = vrot.slane %v669_v63, 2  ;;  %v828_v10 = vmul.f32 %v2474_v24, %v2769_v43 }
 0x117   : > { %v1384_v7 = vadd.f32 %v1346_v14, %v1260_v62  ;;  %v854_v5 = vmul.f32 %v2476_v25, %v2769_v43  ;;  %v731_v9 = vrot.slane %v670_v6, 2  ;;  %v855_v15 = vmul.f32 %v2476_v25, %v2778_v58 }
 0x118   : > { %v1091_v12 = vadd.f32 %v1075_v48, %v783_v0  ;;  %v607_v13 = vsel %vm574_vm0, %v605_v2, %v606_v4  ;;  %v978_v29 = vmul.f32 %v2478_v26, %v2769_v43  ;;  %v979_v17 = vmul.f32 %v2478_v26, %v2778_v58 }
 0x119   : > { %v643_v18 = vadd.f32 %v607_v13, %v518_v49  ;;  %v914_v20 = vrot.slane %v854_v5, 1  ;;  %v732_v1 = vsel %vm699_vm1, %v730_v8, %v731_v9  ;;  %v915_v11 = vrot.slane %v855_v15, 1 }
 0x11a   : > { %v1400_v28 = vadd.f32 %v1384_v7, %v1091_v12  ;;  %v1137_v3 = vmul.f32 %v2488_v35, %v2837_v16  ;;  %v1038_v51 = vrot.slane %v978_v29, 2  ;;  %v1039_v31 = vrot.slane %v979_v17, 2 }
 0x11b   : > { %v768_v30 = vadd.f32 %v732_v1, %v643_v18  ;;  %v1163_v55 = vmul.f32 %v2490_v36, %v2837_v16  ;;  %v916_v32 = vsel %vm574_vm0, %v914_v20, %v915_v11  ;;  %v1164_v37 = vmul.f32 %v2490_v36, %v2843_v27 }
 0x11c   : > { %1416 = vst [vmem:[%s2558_s3 + $0x58] sm:$0xff] %v1400_v28  ;;  %v1287_v39 = vmul.f32 %v2503_v46, %v2837_v16  ;;  %v1288_v40 = vmul.f32 %v2503_v46, %v2843_v27  ;;  %v952_v41 = vadd.f32 %v916_v32, %v828_v10  ;;  %v1040_v50 = vsel %vm699_vm1, %v1038_v51, %v1039_v31 }
 0x11d   : > { %v784_v45 = vadd.f32 %v2519_v61, %v768_v30  ;;  %v1223_v44 = vrot.slane %v1163_v55, 1  ;;  %v1224_v54 = vrot.slane %v1164_v37, 1  ;;  %v519_v57 = vmul.f32 %v2468_v21, %v2713_v19 }
 0x11e   : > { %v1347_v56 = vrot.slane %v1287_v39, 2  ;;  %v1348_v47 = vrot.slane %v1288_v40, 2  ;;  %v1076_v59 = vadd.f32 %v1040_v50, %v952_v41  ;;  %v546_v33 = vmul.f32 %v2470_v22, %v498_v42 }
 0x11f   : > { %v671_v49 = vmul.f32 %v2472_v23, %v498_v42  ;;  %v829_v60 = vmul.f32 %v2474_v24, %v2778_v58  ;;  %v1225_v38 = vsel %vm574_vm0, %v1223_v44, %v1224_v54  ;;  %v856_v48 = vmul.f32 %v2476_v25, %v808_v53 }
 0x120   : > { %v1349_v52 = vsel %vm699_vm1, %v1347_v56, %v1348_v47  ;;  %v980_v62 = vmul.f32 %v2478_v26, %v808_v53  ;;  %v1092_v14 = vadd.f32 %v1076_v59, %v784_v45  ;;  %v1261_v63 = vadd.f32 %v1225_v38, %v1137_v3  ;;  %v1118_v53 = vld [vmem:[#allocation2 + $0xd8] sm:$0xff] }
 0x121   : > { %v608_v19 = vrot.slane %v546_v33, 1  ;;  %v733_v0 = vrot.slane %v671_v49, 2  ;;  %v917_v2 = vrot.slane %v856_v48, 1  ;;  %v1138_v7 = vmul.f32 %v2488_v35, %v2843_v27 }
 0x122   : > { %v1041_v6 = vrot.slane %v980_v62, 2  ;;  %v1165_v8 = vmul.f32 %v2490_v36, %v1117_v34  ;;  %v1385_v10 = vadd.f32 %v1349_v52, %v1261_v63  ;;  %v1289_v13 = vmul.f32 %v2503_v46, %v1117_v34 }
 0x123   : > { %v609_v5 = vsel %vm574_vm0, %v606_v4, %v608_v19  ;;  %v734_v12 = vsel %vm699_vm1, %v731_v9, %v733_v0  ;;  %v918_v18 = vsel %vm574_vm0, %v915_v11, %v917_v2  ;;  %v520_v3 = vmul.f32 %v2468_v21, %v2769_v43  ;;  %v811_v2 = vld [vmem:[#allocation2 + $0xd0] sm:$0x3] }
 0x124   : > { %v644_v15 = vadd.f32 %v609_v5, %v519_v57  ;;  %v1042_v20 = vsel %vm699_vm1, %v1039_v31, %v1041_v6  ;;  %v1226_v29 = vrot.slane %v1165_v8, 1  ;;  %v1401_v17 = vadd.f32 %v1385_v10, %v1092_v14  ;;  %v1119_v57 = vld [vmem:[#allocation2 + $0xe0] sm:$0xff]  ;;  %v501_v14 = vld [vmem:[#allocation2 + $0xb8] sm:$0x3]  ;;  %v2924_v10 = vld [vmem:[#allocation9] ss:$0 sm:$0xff] }
 0x125   : > { %v953_v28 = vadd.f32 %v918_v18, %v829_v60  ;;  %v1350_v1 = vrot.slane %v1289_v13, 2  ;;  %v547_v4 = vmul.f32 %v2470_v22, %v2769_v43  ;;  %v2885_v9 = vmul.f32 %v2470_v22, %v2778_v58  ;;  %v2931_v13 = vld [vmem:[#allocation9 + $0x2] ss:$0 sm:$0xff] }
 0x126   : > { %v769_v30 = vadd.f32 %v734_v12, %v644_v15  ;;  %v1227_v51 = vsel %vm574_vm0, %v1224_v54, %v1226_v29  ;;  %1417 = vst [vmem:[%s2558_s3 + $0x60] sm:$0xff] %v1401_v17  ;;  %v672_v32 = vmul.f32 %v2472_v23, %v2769_v43  ;;  %v2895_v40 = vmul.f32 %v2472_v23, %v2778_v58  ;;  %v2928_v12 = vld [vmem:[#allocation9 + $0x1] ss:$0 sm:$0xff]  ;;  %v2934_v15 = vld [vmem:[#allocation9 + $0x4] ss:$0 sm:$0xff] }
 0x127   : > { %v1077_v11 = vadd.f32 %v1042_v20, %v953_v28  ;;  %v1262_v31 = vadd.f32 %v1227_v51, %v1138_v7  ;;  %v1351_v55 = vsel %vm699_vm1, %v1348_v47, %v1350_v1  ;;  %v610_v37 = vrot.slane %v547_v4, 1  ;;  %v1120_v20 = vld [vmem:[#allocation2 + $0xe8] sm:$0x3]  ;;  %v2943_v1 = vld [vmem:[#allocation9 + $0x6] ss:$0 sm:$0xff] }
 0x128   : > { %v785_v21 = vadd.f32 %v2519_v61, %v769_v30  ;;  %v611_v39 = vrot.slane %v2885_v9, 1  ;;  %v735_v22 = vrot.slane %v672_v32, 2  ;;  %v830_v45 = vmul.f32 %v2474_v24, %v2837_v16 }
 0x129   : > { %v1386_v42 = vadd.f32 %v1351_v55, %v1262_v31  ;;  %v857_v41 = vmul.f32 %v2476_v25, %v2837_v16  ;;  %v736_v44 = vrot.slane %v2895_v40, 2  ;;  %v2907_v23 = vmul.f32 %v2476_v25, %v2843_v27 }
 0x12a   : > { %v1093_v50 = vadd.f32 %v1077_v11, %v785_v21  ;;  %v612_v43 = vsel %vm574_vm0, %v610_v37, %v611_v39  ;;  %v981_v24 = vmul.f32 %v2478_v26, %v2837_v16  ;;  %v982_v47 = vmul.f32 %v2478_v26, %v2843_v27  ;;  %v2949_v21 = vld [vmem:[#allocation9 + $0x9] ss:$0 sm:$0xff] }
 0x12b   : > { %v645_v54 = vadd.f32 %v612_v43, %v520_v3  ;;  %v919_v56 = vrot.slane %v857_v41, 1  ;;  %v737_v33 = vsel %vm699_vm1, %v735_v22, %v736_v44  ;;  %v920_v49 = vrot.slane %v2907_v23, 1  ;;  %v479_v43 = vld [vmem:[#allocation2 + $0x8] sm:$0xff] }
 0x12c   : > { %v1402_v59 = vadd.f32 %v1386_v42, %v1093_v50  ;;  %v1139_v60 = vmul.f32 %v2488_v35, %v1118_v53  ;;  %v1043_v25 = vrot.slane %v981_v24, 2  ;;  %v1044_v38 = vrot.slane %v982_v47, 2  ;;  %v478_v50 = vld [vmem:[#allocation2] sm:$0xff] }
 0x12d   : > { %v770_v34 = vadd.f32 %v737_v33, %v645_v54  ;;  %v1166_v52 = vmul.f32 %v2490_v36, %v1118_v53  ;;  %v921_v48 = vsel %vm574_vm0, %v919_v56, %v920_v49  ;;  %v1167_v16 = vmul.f32 %v2490_v36, %v1119_v57  ;;  %v788_v33 = vld [vmem:[#allocation2 + $0x18] sm:$0xff] }
 0x12e   : > { %1418 = vst [vmem:[%s2558_s3 + $0x68] sm:$0xff] %v1402_v59  ;;  %v1290_v26 = vmul.f32 %v2503_v46, %v1118_v53  ;;  %v1291_v62 = vmul.f32 %v2503_v46, %v1119_v57  ;;  %v954_v19 = vadd.f32 %v921_v48, %v830_v45  ;;  %v1045_v35 = vsel %vm699_vm1, %v1043_v25, %v1044_v38  ;;  %v2956_v45 = vld [vmem:[#allocation9 + $0xa] ss:$0 sm:$0xff] }
 0x12f   : > { %v786_v63 = vadd.f32 %v2519_v61, %v770_v34  ;;  %v1228_v0 = vrot.slane %v1166_v52, 1  ;;  %v1229_v6 = vrot.slane %v1167_v16, 1  ;;  %v521_v36 = vmul.f32 %v2924_v10, %v2778_v58  ;;  %v2940_v58 = vld [vmem:[#allocation9 + $0x5] ss:$0 sm:$0xff]  ;;  %v2972_v52 = vld [vmem:[%s3179_s2] ss:$0 sm:$0xff] }
 0x130   : > { %v1352_v7 = vrot.slane %v1290_v26, 2  ;;  %v1353_v8 = vrot.slane %v1291_v62, 2  ;;  %v1078_v5 = vadd.f32 %v1045_v35, %v954_v19  ;;  %v549_v46 = vmul.f32 %v2928_v12, %v501_v14 }
 0x131   : > { %v674_v61 = vmul.f32 %v2931_v13, %v501_v14  ;;  %v831_v18 = vmul.f32 %v2934_v15, %v2843_v27  ;;  %v1230_v29 = vsel %vm574_vm0, %v1228_v0, %v1229_v6  ;;  %v859_v28 = vmul.f32 %v2940_v58, %v811_v2  ;;  %v2946_v27 = vld [vmem:[#allocation9 + $0x8] ss:$0 sm:$0xff] }
 0x132   : > { %v1354_v17 = vsel %vm699_vm1, %v1352_v7, %v1353_v8  ;;  %v983_v3 = vmul.f32 %v2943_v1, %v811_v2  ;;  %v1094_v30 = vadd.f32 %v1078_v5, %v786_v63  ;;  %v1263_v51 = vadd.f32 %v1230_v29, %v1139_v60 }
 0x133   : > { %v613_v4 = vrot.slane %v549_v46, 1  ;;  %v738_v11 = vrot.slane %v674_v61, 2  ;;  %v922_v31 = vrot.slane %v859_v28, 1  ;;  %v1140_v32 = vmul.f32 %v2946_v27, %v1119_v57 }
 0x134   : > { %v1046_v55 = vrot.slane %v983_v3, 2  ;;  %v1168_v37 = vmul.f32 %v2949_v21, %v1120_v20  ;;  %v1387_v40 = vadd.f32 %v1354_v17, %v1263_v51  ;;  %v1292_v41 = vmul.f32 %v2956_v45, %v1120_v20 }
 0x135   : > { %v614_v42 = vsel %vm574_vm0, %v611_v39, %v613_v4  ;;  %v739_v22 = vsel %vm699_vm1, %v736_v44, %v738_v11  ;;  %v923_v53 = vsel %vm574_vm0, %v920_v49, %v922_v31  ;;  %v526_v44 = vmul.f32 %v2928_v12, %v478_v50 }
 0x136   : > { %v646_v23 = vadd.f32 %v614_v42, %v521_v36  ;;  %v1047_v54 = vsel %vm699_vm1, %v1044_v38, %v1046_v55  ;;  %v1231_v56 = vrot.slane %v1168_v37, 1  ;;  %v1403_v24 = vadd.f32 %v1387_v40, %v1094_v30  ;;  %v789_v38 = vld [vmem:[#allocation2 + $0x20] sm:$0xff]  ;;  %v480_v37 = vld [vmem:[#allocation2 + $0x10] sm:$0x3] }
 0x137   : > { %v955_v47 = vadd.f32 %v923_v53, %v831_v18  ;;  %v1355_v9 = vrot.slane %v1292_v41, 2  ;;  %v2964_v59 = vmul.f32 %v2928_v12, %v479_v43  ;;  %v651_v25 = vmul.f32 %v2931_v13, %v478_v50  ;;  %v1098_v18 = vld [vmem:[#allocation2 + $0x38] sm:$0xff] }
 0x138   : > { %v771_v57 = vadd.f32 %v739_v22, %v646_v23  ;;  %v1232_v39 = vsel %vm574_vm0, %v1229_v6, %v1231_v56  ;;  %1419 = vst [vmem:[%s2558_s3 + $0x70] sm:$0xff] %v1403_v24  ;;  %v575_v16 = vrot.slane %v526_v44, 1  ;;  %v2977_v62 = vmul.f32 %v2931_v13, %v479_v43 }
 0x139   : > { %v1079_v60 = vadd.f32 %v1047_v54, %v955_v47  ;;  %v1264_v34 = vadd.f32 %v1232_v39, %v1140_v32  ;;  %v1356_v49 = vsel %vm699_vm1, %v1353_v8, %v1355_v9  ;;  %v576_v26 = vrot.slane %v2964_v59, 1  ;;  %v1097_v8 = vld [vmem:[#allocation2 + $0x30] sm:$0xff]  ;;  %v1099_v39 = vld [vmem:[#allocation2 + $0x40] sm:$0x3] }
 0x13a   : > { %v787_v48 = vadd.f32 %v2972_v52, %v771_v57  ;;  %v506_v63 = vmul.f32 %v2924_v10, %v478_v50  ;;  %v700_v19 = vrot.slane %v651_v25, 2  ;;  %v836_v35 = vmul.f32 %v2940_v58, %v788_v33  ;;  %v790_v50 = vld [vmem:[#allocation2 + $0x28] sm:$0x3] }
 0x13b   : > { %v1388_v14 = vadd.f32 %v1356_v49, %v1264_v34  ;;  %v577_v2 = vsel %vm574_vm0, %v575_v16, %v576_v26  ;;  %v701_v6 = vrot.slane %v2977_v62, 2  ;;  %v837_v7 = vmul.f32 %v2940_v58, %v789_v38 }
 0x13c   : > { %v1095_v0 = vadd.f32 %v1079_v60, %v787_v48  ;;  %v631_v36 = vadd.f32 %v577_v2, %v506_v63  ;;  %v884_v5 = vrot.slane %v836_v35, 1  ;;  %v960_v46 = vmul.f32 %v2943_v1, %v788_v33 }
 0x13d   : > { %v961_v61 = vmul.f32 %v2943_v1, %v789_v38  ;;  %v702_v29 = vsel %vm699_vm1, %v700_v19, %v701_v6  ;;  %v816_v17 = vmul.f32 %v2934_v15, %v788_v33  ;;  %v885_v28 = vrot.slane %v837_v7, 1 }
 0x13e   : > { %v1404_v20 = vadd.f32 %v1388_v14, %v1095_v0  ;;  %v756_v3 = vadd.f32 %v702_v29, %v631_v36  ;;  %v1008_v30 = vrot.slane %v960_v46, 2  ;;  %v1145_v4 = vmul.f32 %v2949_v21, %v1097_v8 }
 0x13f   : > { %v1009_v51 = vrot.slane %v961_v61, 2  ;;  %v886_v11 = vsel %vm574_vm0, %v884_v5, %v885_v28  ;;  %v1146_v31 = vmul.f32 %v2949_v21, %v1098_v18  ;;  %v1269_v55 = vmul.f32 %v2956_v45, %v1097_v8 }
 0x140   : > { %1420 = vst [vmem:[%s2558_s3 + $0x78] sm:$0xff] %v1404_v20  ;;  %v1270_v32 = vmul.f32 %v2956_v45, %v1098_v18  ;;  %v772_v40 = vadd.f32 %v2972_v52, %v756_v3  ;;  %v940_v42 = vadd.f32 %v886_v11, %v816_v17  ;;  %v1193_v41 = vrot.slane %v1145_v4, 1 }
 0x141   : > { %v1010_v22 = vsel %vm699_vm1, %v1008_v30, %v1009_v51  ;;  %v1125_v23 = vmul.f32 %v2946_v27, %v1097_v8  ;;  %v1194_v53 = vrot.slane %v1146_v31, 1  ;;  %v1317_v54 = vrot.slane %v1269_v55, 2 }
 0x142   : > { %v1318_v56 = vrot.slane %v1270_v32, 2  ;;  %v1064_v24 = vadd.f32 %v1010_v22, %v940_v42  ;;  %v507_v47 = vmul.f32 %v2924_v10, %v479_v43  ;;  %v528_v9 = vmul.f32 %v2928_v12, %v480_v37 }
 0x143   : > { %v653_v57 = vmul.f32 %v2931_v13, %v480_v37  ;;  %v1195_v44 = vsel %vm574_vm0, %v1193_v41, %v1194_v53  ;;  %v838_v33 = vmul.f32 %v2940_v58, %v790_v50  ;;  %v962_v60 = vmul.f32 %v2943_v1, %v790_v50 }
 0x144   : > { %v1319_v59 = vsel %vm699_vm1, %v1317_v54, %v1318_v56  ;;  %v1080_v34 = vadd.f32 %v1064_v24, %v772_v40  ;;  %v1249_v49 = vadd.f32 %v1195_v44, %v1125_v23  ;;  %v578_v25 = vrot.slane %v528_v9, 1 }
 0x145   : > { %v703_v48 = vrot.slane %v653_v57, 2  ;;  %v817_v10 = vmul.f32 %v2934_v15, %v789_v38  ;;  %v887_v12 = vrot.slane %v838_v33, 1  ;;  %v1011_v43 = vrot.slane %v962_v60, 2 }
 0x146   : > { %v1147_v13 = vmul.f32 %v2949_v21, %v1099_v39  ;;  %v1373_v16 = vadd.f32 %v1319_v59, %v1249_v49  ;;  %v579_v62 = vsel %vm574_vm0, %v576_v26, %v578_v25  ;;  %v1126_v14 = vmul.f32 %v2946_v27, %v1098_v18 }
 0x147   : > { %v1271_v58 = vmul.f32 %v2956_v45, %v1099_v39  ;;  %v632_v1 = vadd.f32 %v579_v62, %v507_v47  ;;  %v704_v63 = vsel %vm699_vm1, %v701_v6, %v703_v48  ;;  %v888_v15 = vsel %vm574_vm0, %v885_v28, %v887_v12 }
 0x148   : > { %v1196_v38 = vrot.slane %v1147_v13, 1  ;;  %v1389_v19 = vadd.f32 %v1373_v16, %v1080_v34  ;;  %v941_v35 = vadd.f32 %v888_v15, %v817_v10  ;;  %v1012_v21 = vsel %vm699_vm1, %v1009_v51, %v1011_v43 }
 0x149   : > { %v1320_v0 = vrot.slane %v1271_v58, 2  ;;  %v757_v26 = vadd.f32 %v704_v63, %v632_v1 }
 0x14a   : > { %v1197_v27 = vsel %vm574_vm0, %v1194_v53, %v1196_v38  ;;  %1405 = vst [vmem:[%s2558_s3] sm:$0xff] %v1389_v19  ;;  %v1065_v7 = vadd.f32 %v1012_v21, %v941_v35 }
 0x14b   : > { %v1250_v45 = vadd.f32 %v1197_v27, %v1126_v14  ;;  %v1321_v2 = vsel %vm699_vm1, %v1318_v56, %v1320_v0  ;;  %v773_v6 = vadd.f32 %v2972_v52, %v757_v26 }
 0x14d   : > { %v1081_v8 = vadd.f32 %v1065_v7, %v773_v6  ;;  %v1374_v36 = vadd.f32 %v1321_v2, %v1250_v45 }
 0x14f   : > { %v1390_v5 = vadd.f32 %v1374_v36, %v1081_v8 }
 0x151   : > { %1406 = vst [vmem:[%s2558_s3 + $0x8] sm:$0xff] %v1390_v5 }
 0x152   : > { %1929 = shalt.err (!%p1926_p11)
}
 0x153   : > { %s1930_s3 = scalar_lea.hbm %s3024_s26, 2048  ;;  %s1934_s29 = scalar_lea.hbm %s3181_s5, 8192 }
 0x154   : > { %p1931_p13 = scmp.ne.s32.totalorder %s3024_s26, %s1930_s3  ;;  %p1935_p3 = scmp.lt.s32.totalorder %s3024_s26, %s3181_s5 }
 0x155   : > { %p1936_p0 = scmp.lt.s32.totalorder %s1934_s29, %s1930_s3 }
 0x156   : > { %p1932_p12 = pnand %p1931_p13, %p3182_p10 }
 0x157   : > { %p1937_p1 = por %p1936_p0, %p1935_p3 }
 0x158   : > { %p1933_p7 = pneg %p1932_p12 }
 0x15a   : > { %p1938_p2 = pnand %p1937_p1, %p1933_p7 }
 0x15c   : > { %1941 = shalt.err (!%p1938_p2)
}
 0x15d   : > { %s2088_s9 = smov 128   ;;  %s2089_s17 = smov 8  }
 0x15e   : > { %1639 = dma.vmem_to_hbm [thread:$0]  (%p3182_p10), %s3019_s1, 2048, %s3024_s26, %s1422_s28, %s2088_s9, %s2088_s9, %s2089_s17  }
 0x15f PF: > { %s3183_s16 = sld [smem:[#allocation26_spill]]  ;;  %p1662_p6 = scmp.ge.s32.totalorder %s2076_s6, 2 }
 0x160   : > { %s1452_s18 = sand.u32 1, %s2048_s24  }
 0x161   : > { %s1453_s14 = scalar_lea.sflag [#allocation5], %s1452_s18 }
 0x165   : > { %p3184_p9 = scmp.ne.s32.totalorder %s3183_s16, 0 }
 0x167   : > { %p1656_p8 = pnand %p1662_p6, %p3184_p9 }
 0x169   : > { %p1657_p4 = pneg %p1656_p8 }
 0x16b   : > { %2015 = dma.done.wait (%p1657_p4), %s1453_s14, 2048  }
 0x16c   : > { %2017 = vsyncadd (%p1657_p4), %s1453_s14, 4294965248  ;;  %s25_s6 = sadd.s32 1, %s2076_s6   ;;  %s3186_s7 = sld [smem:[#allocation17_spill]] }
 0x16d   : > { %p3055_p5 = scmp.ge.s32.totalorder %s25_s6, 6   ;;  %s3187_s23 = sld [smem:[#allocation24_spill]] }
 0x16e   : > { %s3188_s1 = sld [smem:[#allocation18_spill]]  ;;  %s3193_s18 = smov %s2028_s19 }
 0x16f   : > { %s3189_s26 = sld [smem:[#allocation25_spill]]  ;;  %s3194_s19 = smov %s2032_s20 }
 0x170   : > { %s3190_s28 = sld [smem:[#allocation21_spill]]  ;;  %s3195_s20 = smov %s2369_s27 }
 0x171   : > { %s3191_s29 = sld [smem:[#allocation22_spill]]  ;;  %s3196_s21 = smov %s2040_s22 }
 0x172   : > { %s3192_s12 = sld [smem:[#allocation23_spill]]  ;;  %s3197_s22 = smov %s3186_s7 }
 0x173   : > { %s3198_s24 = smov %s2052_s25 }
 0x174   : > { %s3199_s25 = smov %s3188_s1  ;;  %24 = sbr.rel (!%p3055_p5) target bundleno = 19 (0x13), region = 118 }
 0x176   : > { %s3200_s27 = smov %s3190_s28  ;;  %s3201_s28 = smov %s2072_s30 }
 0x178   : > { %s3202_s30 = smov %s3192_s12 }
 0x179   :  { %1458 = vsyncpa [#allocation4], 1 }
 0x17a   :  { %1460 = vsyncpa [#allocation4 + $0x1], 1 }
 0x17b   :  { %1461 = vsyncpa [#allocation7], 1 }
 0x17c   :  { %1463 = vsyncpa [#allocation7 + $0x1], 1 }
 0x17d   :  { %1464 = vsyncpa [#allocation10], 1 }
 0x17e   :  { %1465 = vsyncpa [#allocation5], 1 }
 0x17f   :  { %1467 = vsyncpa [#allocation5 + $0x1], 1 }

</bundles_post_ra>
